<compile_context>
chip_gen: v5e
topology: v5e:2x2
jax: 0.10.0
libtpu: 0.0.40
codegen_flags: <defaults>
</compile_context>

<pallas_src>
import functools

import jax
import jax.numpy as jnp
from jax.experimental import pallas as pl
from jax.experimental.pallas import tpu as pltpu

EPS = 1e-5
NEG_INF = -1e30

# Flip to True on v6e/v7x production runs to feed bf16 weights to the MXU
# (weights are cast at the pallas_call boundary, halving weight DMA bytes).
# Accumulation stays f32 (preferred_element_type) and all LayerNorm / softmax /
# GELU math stays f32 (v5e-safe).  Default False for f32-faithful semantics.
MXU_BF16 = False


# ----------------------------- in-kernel helpers -----------------------------
def _matmul(a, b):
    if b.dtype == jnp.bfloat16:
        a = a.astype(jnp.bfloat16)
    return jnp.dot(a, b, preferred_element_type=jnp.float32)


def _gelu(x):
    # exact GELU: 0.5 * x * (1 + erf(x / sqrt(2)))
    return 0.5 * x * (1.0 + jax.lax.erf(x * 0.7071067811865476))


def _layernorm(x, g, b):
    mu = jnp.mean(x, axis=-1, keepdims=True)
    xc = x - mu
    var = jnp.mean(xc * xc, axis=-1, keepdims=True)
    return xc * jax.lax.rsqrt(var + EPS) * g + b


# ----------------------------- fused ViT kernel ------------------------------
def _vit_kernel(patches_ref, pw_ref, add_ref,
                ln1g_ref, ln1b_ref, wqkv_ref, bqkv_ref,
                ln2g_ref, ln2b_ref, w1_ref, b1_ref, w2_ref, b2_ref,
                hw1_ref, hb1_ref, hw2_ref, hb2_ref,
                seq_ref, logit_ref,
                act_ref, *, heads, valid_tokens):
    layer = pl.program_id(1)
    n_layers = pl.num_programs(1)

    # ---- layer 0: fused patch-embed + class-token + position-embed ----------
    @pl.when(layer == 0)
    def _():
        act_ref[...] = _matmul(patches_ref[0], pw_ref[...]) + add_ref[...]

    x = act_ref[...]                      # (S_pad, E) resident activation
    s_pad, e = x.shape
    dh = e // heads

    # ---- pre-norm + fused QKV projection (single (E, 3E) matmul) ------------
    h = _layernorm(x, ln1g_ref[0], ln1b_ref[0])
    qkv = _matmul(h, wqkv_ref[0]) + bqkv_ref[0]
    q = qkv[:, :e]
    k = qkv[:, e:2 * e]
    v = qkv[:, 2 * e:]

    # key-padding mask: padded tokens must receive (exactly) zero attention
    col = jax.lax.broadcasted_iota(jnp.int32, (s_pad, s_pad), 1)
    neg = jnp.where(col < valid_tokens, 0.0, NEG_INF).astype(jnp.float32)

    # ---- multi-head attention (no 1/sqrt(dh) scale, no out-projection) ------
    # heads unrolled at trace time; lane slices are at 32-lane offsets.
    outs = []
    for hd in range(heads):
        qh = q[:, hd * dh:(hd + 1) * dh]
        kh = k[:, hd * dh:(hd + 1) * dh]
        vh = v[:, hd * dh:(hd + 1) * dh]
        s = jax.lax.dot_general(qh, kh, (((1,), (1,)), ((), ())),
                                preferred_element_type=jnp.float32)
        s = s + neg
        s = s - jnp.max(s, axis=-1, keepdims=True)
        p = jnp.exp(s)
        p = p * pl.reciprocal(jnp.sum(p, axis=-1, keepdims=True), approx=True)
        outs.append(_matmul(p, vh))
    attn = jnp.concatenate(outs, axis=-1)

    # ---- residual + second norm + GELU FFN + residual ------------------------
    x2 = attn + x
    h2 = _layernorm(x2, ln2g_ref[0], ln2b_ref[0])
    f = _gelu(_matmul(h2, w1_ref[0]) + b1_ref[0])
    f = _matmul(f, w2_ref[0]) + b2_ref[0]
    y = f + x2
    act_ref[...] = y                      # carried in VMEM to the next layer

    # ---- last layer: write sequence output + fused classification head ------
    @pl.when(layer == n_layers - 1)
    def _():
        seq_ref[0] = y
        cls_tok = y[0:1, :]
        hh = _gelu(_matmul(cls_tok, hw1_ref[...]) + hb1_ref[...])
        logit_ref[0] = _matmul(hh, hw2_ref[...]) + hb2_ref[...]


# ----------------------------- full model forward ----------------------------
def vision_transformer_forward(x, params, *, patch_size, heads):
    B, C, W, H = x.shape
    p = patch_size
    nW, nH = W // p, H // p
    S = nW * nH                 # number of patches
    T = S + 1                   # tokens incl. class token
    E = params["patch_w"].shape[1]
    P = p * p * C
    L = params["wqkv"].shape[0]
    F = params["w1"].shape[2]
    classes = params["head_w2"].shape[1]
    dh = E // heads
    S_pad = ((T + 7) // 8) * 8  # pad token axis to a multiple of 8 sublanes

    # --- patch extraction == torch unfold(2).unfold(3).view.permute.reshape ---
    x6 = x.reshape(B, C, nW, p, nH, p).transpose(0, 2, 4, 3, 5, 1)
    patches = x6.reshape(B, S, P)

    # token-aligned patch matrix: row 0 = class-token slot (zeros -> matmul 0),
    # rows 1..S = patches, rows T..S_pad-1 = padding (zeros)
    patches_tok = jnp.zeros((B, S_pad, P), jnp.float32)
    patches_tok = patches_tok.at[:, 1:T, :].set(patches)

    # additive embedding term folded per row:
    #   row 0     -> class_token + position_embed[0]
    #   rows 1..S -> patch_to_embed bias + position_embed[1..S]
    #   pad rows  -> 0
    pos = params["position_embed"][:T]
    addvec = jnp.zeros((S_pad, E), jnp.float32)
    addvec = addvec.at[0, :].set(params["class_token"][0] + pos[0])
    addvec = addvec.at[1:T, :].set(params["patch_b"] + pos[1:])

    wdt = jnp.bfloat16 if MXU_BF16 else jnp.float32
    patch_w = params["patch_w"].astype(wdt)
    wqkv = params["wqkv"].astype(wdt)
    w1 = params["w1"].astype(wdt)
    w2 = params["w2"].astype(wdt)
    hw1 = params["head_w1"].astype(wdt)
    hw2 = params["head_w2"].astype(wdt)

    # advisory cost estimate for XLA scheduling
    flops_layer = (2 * S_pad * E * 3 * E
                   + heads * 2 * (2 * S_pad * S_pad * dh)
                   + 2 * S_pad * E * F + 2 * S_pad * F * E)
    flops = B * (L * flops_layer + 2 * S_pad * P * E
                 + 2 * (E * (E // 2) + (E // 2) * classes))
    trans = B * (L * (heads * S_pad * S_pad + S_pad * F) + E // 2)
    w_bytes = 4 * (P * E + S_pad * E
                   + L * (E * 3 * E + E * F + F * E + 8 * E + F)
                   + E * (E // 2) + (E // 2) * classes + E // 2 + classes)
    a_bytes = 4 * (B * S_pad * P + B * S_pad * E + B * classes)
    cost = pl.CostEstimate(flops=int(flops), transcendentals=int(trans),
                           bytes_accessed=int(B * w_bytes + a_bytes))

    def lay(shape):      # per-layer stacked weights, indexed by the layer axis
        return pl.BlockSpec((1,) + shape, lambda b, l: (l, 0, 0))

    def full(shape):     # layer-invariant weights (constant block index)
        return pl.BlockSpec(shape, lambda b, l: (0, 0))

    kernel = functools.partial(_vit_kernel, heads=heads, valid_tokens=T)

    seq_out, logits = pl.pallas_call(
        kernel,
        grid=(B, L),
        in_specs=[
            pl.BlockSpec((1, S_pad, P), lambda b, l: (b, 0, 0)),    # patches
            full((P, E)),                                           # patch W
            full((S_pad, E)),                                       # cls/pos/bias add
            lay((1, E)), lay((1, E)),                               # ln1 gamma/beta
            lay((E, 3 * E)), lay((1, 3 * E)),                       # fused Wqkv, bqkv
            lay((1, E)), lay((1, E)),                               # ln2 gamma/beta
            lay((E, F)), lay((1, F)),                               # ffn W1, b1
            lay((F, E)), lay((1, E)),                               # ffn W2, b2
            full((E, E // 2)), full((1, E // 2)),                   # head fc1
            full((E // 2, classes)), full((1, classes)),            # head fc2
        ],
        out_specs=(
            pl.BlockSpec((1, S_pad, E), lambda b, l: (b, 0, 0)),    # sequence out
            pl.BlockSpec((1, 1, classes), lambda b, l: (b, 0, 0)),  # logits
        ),
        out_shape=(
            jax.ShapeDtypeStruct((B, S_pad, E), jnp.float32),
            jax.ShapeDtypeStruct((B, 1, classes), jnp.float32),
        ),
        scratch_shapes=[pltpu.VMEM((S_pad, E), jnp.float32)],       # resident act
        compiler_params=pltpu.CompilerParams(
            dimension_semantics=("parallel", "arbitrary"),
            vmem_limit_bytes=32 * 1024 * 1024),
        cost_estimate=cost,
    )(patches_tok, patch_w, addvec,
      params["ln1_g"], params["ln1_b"], wqkv, params["bqkv"],
      params["ln2_g"], params["ln2_b"], w1, params["b1"], w2, params["b2"],
      hw1, params["head_b1"], hw2, params["head_b2"])

    return logits[:, 0, :], seq_out[:, :T, :]


# ----------------------------- deterministic param init ----------------------
def init_params(key, *, patch_size, channels, embed_dim, classes, layers,
                forward_expansion, max_len):
    keys = jax.random.split(key, 8)
    P = patch_size * patch_size * channels
    F = embed_dim * forward_expansion

    def nrm(k, shape, scale=0.02):
        return (scale * jax.random.normal(k, shape)).astype(jnp.float32)

    return {
        "patch_w": nrm(keys[0], (P, embed_dim)),
        "patch_b": jnp.zeros((1, embed_dim), jnp.float32),
        "position_embed": jax.random.normal(keys[1], (max_len, embed_dim)
                                            ).astype(jnp.float32),
        "class_token": jnp.zeros((1, embed_dim), jnp.float32),
        "head_w1": nrm(keys[2], (embed_dim, embed_dim // 2)),
        "head_b1": jnp.zeros((1, embed_dim // 2), jnp.float32),
        "head_w2": nrm(keys[3], (embed_dim // 2, classes)),
        "head_b2": jnp.zeros((1, classes), jnp.float32),
        # per-layer transformer weights stacked along a leading layer axis
        "ln1_g": jnp.ones((layers, 1, embed_dim), jnp.float32),
        "ln1_b": jnp.zeros((layers, 1, embed_dim), jnp.float32),
        "wqkv": nrm(keys[4], (layers, embed_dim, 3 * embed_dim)),
        "bqkv": jnp.zeros((layers, 1, 3 * embed_dim), jnp.float32),
        "ln2_g": jnp.ones((layers, 1, embed_dim), jnp.float32),
        "ln2_b": jnp.zeros((layers, 1, embed_dim), jnp.float32),
        "w1": nrm(keys[5], (layers, embed_dim, F)),
        "b1": jnp.zeros((layers, 1, F), jnp.float32),
        "w2": nrm(keys[6], (layers, F, embed_dim)),
        "b2": jnp.zeros((layers, 1, embed_dim), jnp.float32),
    }


# ----------------------------- main -------------------------------------------
if __name__ == "__main__":
    # small config consistent with the module (channels must be 3)
    patch_size = 4
    channels = 3
    embed_dim = 128
    heads = 4
    layers = 2
    classes = 16
    forward_expansion = 1
    max_len = 100

    batch, width, height = 2, 16, 16   # seq = 16 patches + 1 class token = 17

    key = jax.random.PRNGKey(0)
    pkey, xkey = jax.random.split(key)
    params = init_params(pkey, patch_size=patch_size, channels=channels,
                         embed_dim=embed_dim, classes=classes, layers=layers,
                         forward_expansion=forward_expansion, max_len=max_len)

    x = jax.random.normal(xkey, (batch, channels, width, height), jnp.float32)

    fwd = jax.jit(functools.partial(vision_transformer_forward,
                                    patch_size=patch_size, heads=heads))
    class_out, seq_out = fwd(x, params)
    jax.block_until_ready((class_out, seq_out))

    T = (width // patch_size) * (height // patch_size) + 1
    assert class_out.shape == (batch, classes)
    assert seq_out.shape == (batch, T, embed_dim)
    assert bool(jnp.all(jnp.isfinite(class_out)))
    assert bool(jnp.all(jnp.isfinite(seq_out)))
    print("KERNEL_OK")
</pallas_src>

<mosaic_0001>
module attributes {stable_mosaic.version = 11 : i64} {
  func.func @_vit_kernel(%arg0: i32, %arg1: i32, %arg2: memref<1x24x48xf32, #tpu.memory_space<vmem>>, %arg3: memref<48x128xf32, #tpu.memory_space<vmem>>, %arg4: memref<24x128xf32, #tpu.memory_space<vmem>>, %arg5: memref<1x1x128xf32, #tpu.memory_space<vmem>>, %arg6: memref<1x1x128xf32, #tpu.memory_space<vmem>>, %arg7: memref<1x128x384xf32, #tpu.memory_space<vmem>>, %arg8: memref<1x1x384xf32, #tpu.memory_space<vmem>>, %arg9: memref<1x1x128xf32, #tpu.memory_space<vmem>>, %arg10: memref<1x1x128xf32, #tpu.memory_space<vmem>>, %arg11: memref<1x128x128xf32, #tpu.memory_space<vmem>>, %arg12: memref<1x1x128xf32, #tpu.memory_space<vmem>>, %arg13: memref<1x128x128xf32, #tpu.memory_space<vmem>>, %arg14: memref<1x1x128xf32, #tpu.memory_space<vmem>>, %arg15: memref<128x64xf32, #tpu.memory_space<vmem>>, %arg16: memref<1x64xf32, #tpu.memory_space<vmem>>, %arg17: memref<64x16xf32, #tpu.memory_space<vmem>>, %arg18: memref<1x16xf32, #tpu.memory_space<vmem>>, %arg19: memref<1x24x128xf32, #tpu.memory_space<vmem>>, %arg20: memref<1x1x16xf32, #tpu.memory_space<vmem>>, %arg21: memref<24x128xf32, #tpu.memory_space<vmem>>) attributes {dimension_semantics = [#tpu.dimension_semantics<parallel>, #tpu.dimension_semantics<arbitrary>], iteration_bounds = array<i64: 2, 2>, scalar_prefetch = 0 : i64, scratch_operands = 1 : i64, tpu.core_type = #tpu.core_type<tc>, window_params = [{transform_indices = @transform_0, window_bounds = array<i64: 1, 24, 48>}, {pipeline_mode = #tpu.pipeline_mode<synchronous>, transform_indices = @transform_1, window_bounds = array<i64: 48, 128>}, {pipeline_mode = #tpu.pipeline_mode<synchronous>, transform_indices = @transform_2, window_bounds = array<i64: 24, 128>}, {transform_indices = @transform_3, window_bounds = array<i64: 1, 1, 128>}, {transform_indices = @transform_4, window_bounds = array<i64: 1, 1, 128>}, {transform_indices = @transform_5, window_bounds = array<i64: 1, 128, 384>}, {transform_indices = @transform_6, window_bounds = array<i64: 1, 1, 384>}, {transform_indices = @transform_7, window_bounds = array<i64: 1, 1, 128>}, {transform_indices = @transform_8, window_bounds = array<i64: 1, 1, 128>}, {transform_indices = @transform_9, window_bounds = array<i64: 1, 128, 128>}, {transform_indices = @transform_10, window_bounds = array<i64: 1, 1, 128>}, {transform_indices = @transform_11, window_bounds = array<i64: 1, 128, 128>}, {transform_indices = @transform_12, window_bounds = array<i64: 1, 1, 128>}, {pipeline_mode = #tpu.pipeline_mode<synchronous>, transform_indices = @transform_13, window_bounds = array<i64: 128, 64>}, {pipeline_mode = #tpu.pipeline_mode<synchronous>, transform_indices = @transform_14, window_bounds = array<i64: 1, 64>}, {pipeline_mode = #tpu.pipeline_mode<synchronous>, transform_indices = @transform_15, window_bounds = array<i64: 64, 16>}, {pipeline_mode = #tpu.pipeline_mode<synchronous>, transform_indices = @transform_16, window_bounds = array<i64: 1, 16>}, {transform_indices = @transform_17, window_bounds = array<i64: 1, 24, 128>}, {transform_indices = @transform_18, window_bounds = array<i64: 1, 1, 16>}]} {
    %c0_i32 = arith.constant 0 : i32
    %0 = arith.cmpi eq, %arg1, %c0_i32 : i32
    %1 = arith.extui %0 : i1 to i32
    %c0_i32_0 = arith.constant 0 : i32
    %2 = arith.cmpi ne, %1, %c0_i32_0 : i32
    scf.if %2 {
      %c0_68 = arith.constant 0 : index
      %c0_69 = arith.constant 0 : index
      %c0_70 = arith.constant 0 : index
      %161 = vector.load %arg2[%c0_68, %c0_69, %c0_70] : memref<1x24x48xf32, #tpu.memory_space<vmem>>, vector<1x24x48xf32>
      %162 = vector.shape_cast %161 : vector<1x24x48xf32> to vector<24x48xf32>
      %c0_71 = arith.constant 0 : index
      %c0_72 = arith.constant 0 : index
      %163 = vector.load %arg3[%c0_71, %c0_72] : memref<48x128xf32, #tpu.memory_space<vmem>>, vector<48x128xf32>
      %cst_73 = arith.constant dense<0.000000e+00> : vector<24x128xf32>
      %164 = tpu.matmul %162, %163, %cst_73 {dimension_numbers = #tpu.dot_dimension_numbers<[1], [0], [0], [1], [0, 0, 1, 1], [], []>} : vector<24x48xf32>, vector<48x128xf32>, vector<24x128xf32> -> vector<24x128xf32>
      %c0_74 = arith.constant 0 : index
      %c0_75 = arith.constant 0 : index
      %165 = vector.load %arg4[%c0_74, %c0_75] : memref<24x128xf32, #tpu.memory_space<vmem>>, vector<24x128xf32>
      %166 = arith.addf %164, %165 : vector<24x128xf32>
      %c0_76 = arith.constant 0 : index
      %c0_77 = arith.constant 0 : index
      %167 = vector.load %arg21[%c0_76, %c0_77] : memref<24x128xf32, #tpu.memory_space<vmem>>, vector<24x128xf32>
      tpu.vector_store %arg21[%c0_76, %c0_77], %166 {strides = array<i32>} : memref<24x128xf32, #tpu.memory_space<vmem>>, vector<24x128xf32>,
    } else {
    }
    %c0 = arith.constant 0 : index
    %c0_1 = arith.constant 0 : index
    %3 = vector.load %arg21[%c0, %c0_1] : memref<24x128xf32, #tpu.memory_space<vmem>>, vector<24x128xf32>
    %c0_2 = arith.constant 0 : index
    %c0_3 = arith.constant 0 : index
    %c0_4 = arith.constant 0 : index
    %4 = vector.load %arg5[%c0_2, %c0_3, %c0_4] : memref<1x1x128xf32, #tpu.memory_space<vmem>>, vector<1x1x128xf32>
    %5 = vector.shape_cast %4 : vector<1x1x128xf32> to vector<1x128xf32>
    %c0_5 = arith.constant 0 : index
    %c0_6 = arith.constant 0 : index
    %c0_7 = arith.constant 0 : index
    %6 = vector.load %arg6[%c0_5, %c0_6, %c0_7] : memref<1x1x128xf32, #tpu.memory_space<vmem>>, vector<1x1x128xf32>
    %7 = vector.shape_cast %6 : vector<1x1x128xf32> to vector<1x128xf32>
    %cst = arith.constant dense<0.000000e+00> : vector<24xf32>
    %8 = vector.multi_reduction <add>, %3, %cst [1] : vector<24x128xf32> to vector<24xf32>
    %9 = vector.shape_cast %8 : vector<24xf32> to vector<24x1xf32>
    %cst_8 = arith.constant 1.280000e+02 : f32
    %10 = vector.broadcast %cst_8 : f32 to vector<24x1xf32>
    %11 = arith.divf %9, %10 : vector<24x1xf32>
    %12 = vector.broadcast %11 : vector<24x1xf32> to vector<24x128xf32>
    %13 = arith.subf %3, %12 : vector<24x128xf32>
    %14 = arith.mulf %13, %13 : vector<24x128xf32>
    %cst_9 = arith.constant dense<0.000000e+00> : vector<24xf32>
    %15 = vector.multi_reduction <add>, %14, %cst_9 [1] : vector<24x128xf32> to vector<24xf32>
    %16 = vector.shape_cast %15 : vector<24xf32> to vector<24x1xf32>
    %cst_10 = arith.constant 1.280000e+02 : f32
    %17 = vector.broadcast %cst_10 : f32 to vector<24x1xf32>
    %18 = arith.divf %16, %17 : vector<24x1xf32>
    %cst_11 = arith.constant 9.99999974E-6 : f32
    %19 = vector.broadcast %cst_11 : f32 to vector<24x1xf32>
    %20 = arith.addf %18, %19 : vector<24x1xf32>
    %21 = math.rsqrt %20 : vector<24x1xf32>
    %22 = vector.broadcast %21 : vector<24x1xf32> to vector<24x128xf32>
    %23 = arith.mulf %13, %22 : vector<24x128xf32>
    %24 = vector.broadcast %5 : vector<1x128xf32> to vector<24x128xf32>
    %25 = arith.mulf %23, %24 : vector<24x128xf32>
    %26 = vector.broadcast %7 : vector<1x128xf32> to vector<24x128xf32>
    %27 = arith.addf %25, %26 : vector<24x128xf32>
    %c0_12 = arith.constant 0 : index
    %c0_13 = arith.constant 0 : index
    %c0_14 = arith.constant 0 : index
    %28 = vector.load %arg7[%c0_12, %c0_13, %c0_14] : memref<1x128x384xf32, #tpu.memory_space<vmem>>, vector<1x128x384xf32>
    %29 = vector.shape_cast %28 : vector<1x128x384xf32> to vector<128x384xf32>
    %cst_15 = arith.constant dense<0.000000e+00> : vector<24x384xf32>
    %30 = tpu.matmul %27, %29, %cst_15 {dimension_numbers = #tpu.dot_dimension_numbers<[1], [0], [0], [1], [0, 0, 1, 1], [], []>} : vector<24x128xf32>, vector<128x384xf32>, vector<24x384xf32> -> vector<24x384xf32>
    %c0_16 = arith.constant 0 : index
    %c0_17 = arith.constant 0 : index
    %c0_18 = arith.constant 0 : index
    %31 = vector.load %arg8[%c0_16, %c0_17, %c0_18] : memref<1x1x384xf32, #tpu.memory_space<vmem>>, vector<1x1x384xf32>
    %32 = vector.shape_cast %31 : vector<1x1x384xf32> to vector<1x384xf32>
    %33 = vector.broadcast %32 : vector<1x384xf32> to vector<24x384xf32>
    %34 = arith.addf %30, %33 : vector<24x384xf32>
    %35 = vector.extract_strided_slice %34 {offsets = [0, 0], sizes = [24, 128], strides = [1, 1]} : vector<24x384xf32> to vector<24x128xf32>
    %36 = vector.extract_strided_slice %34 {offsets = [0, 128], sizes = [24, 128], strides = [1, 1]} : vector<24x384xf32> to vector<24x128xf32>
    %37 = vector.extract_strided_slice %34 {offsets = [0, 256], sizes = [24, 128], strides = [1, 1]} : vector<24x384xf32> to vector<24x128xf32>
    %38 = tpu.iota {dimensions = array<i32: 1>} : vector<24x24xi32>
    %c17_i32 = arith.constant 17 : i32
    %39 = vector.broadcast %c17_i32 : i32 to vector<24x24xi32>
    %40 = arith.cmpi slt, %38, %39 : vector<24x24xi32>
    %cst_19 = arith.constant 0.000000e+00 : f32
    %cst_20 = arith.constant -1.000000e+30 : f32
    %41 = vector.broadcast %cst_19 : f32 to vector<24x24xf32>
    %42 = vector.broadcast %cst_20 : f32 to vector<24x24xf32>
    %43 = arith.select %40, %41, %42 : vector<24x24xi1>, vector<24x24xf32>
    %44 = vector.extract_strided_slice %35 {offsets = [0, 0], sizes = [24, 32], strides = [1, 1]} : vector<24x128xf32> to vector<24x32xf32>
    %45 = vector.extract_strided_slice %36 {offsets = [0, 0], sizes = [24, 32], strides = [1, 1]} : vector<24x128xf32> to vector<24x32xf32>
    %46 = vector.extract_strided_slice %37 {offsets = [0, 0], sizes = [24, 32], strides = [1, 1]} : vector<24x128xf32> to vector<24x32xf32>
    %cst_21 = arith.constant dense<0.000000e+00> : vector<24x24xf32>
    %47 = tpu.matmul %44, %45, %cst_21 {dimension_numbers = #tpu.dot_dimension_numbers<[1], [1], [0], [0], [0, 0, 1, 0], [], []>} : vector<24x32xf32>, vector<24x32xf32>, vector<24x24xf32> -> vector<24x24xf32>
    %48 = arith.addf %47, %43 : vector<24x24xf32>
    %cst_22 = arith.constant dense<0xFF800000> : vector<24xf32>
    %49 = vector.multi_reduction <maximumf>, %48, %cst_22 [1] : vector<24x24xf32> to vector<24xf32>
    %50 = vector.shape_cast %49 : vector<24xf32> to vector<24x1xf32>
    %51 = vector.broadcast %50 : vector<24x1xf32> to vector<24x24xf32>
    %52 = arith.subf %48, %51 : vector<24x24xf32>
    %53 = math.exp %52 : vector<24x24xf32>
    %cst_23 = arith.constant dense<0.000000e+00> : vector<24xf32>
    %54 = vector.multi_reduction <add>, %53, %cst_23 [1] : vector<24x24xf32> to vector<24xf32>
    %55 = vector.shape_cast %54 : vector<24xf32> to vector<24x1xf32>
    %56 = tpu.reciprocal %55 {approx = true} : vector<24x1xf32> -> vector<24x1xf32>
    %57 = vector.broadcast %56 : vector<24x1xf32> to vector<24x24xf32>
    %58 = arith.mulf %53, %57 : vector<24x24xf32>
    %cst_24 = arith.constant dense<0.000000e+00> : vector<24x32xf32>
    %59 = tpu.matmul %58, %46, %cst_24 {dimension_numbers = #tpu.dot_dimension_numbers<[1], [0], [0], [1], [0, 0, 1, 1], [], []>} : vector<24x24xf32>, vector<24x32xf32>, vector<24x32xf32> -> vector<24x32xf32>
    %60 = vector.extract_strided_slice %35 {offsets = [0, 32], sizes = [24, 32], strides = [1, 1]} : vector<24x128xf32> to vector<24x32xf32>
    %61 = vector.extract_strided_slice %36 {offsets = [0, 32], sizes = [24, 32], strides = [1, 1]} : vector<24x128xf32> to vector<24x32xf32>
    %62 = vector.extract_strided_slice %37 {offsets = [0, 32], sizes = [24, 32], strides = [1, 1]} : vector<24x128xf32> to vector<24x32xf32>
    %cst_25 = arith.constant dense<0.000000e+00> : vector<24x24xf32>
    %63 = tpu.matmul %60, %61, %cst_25 {dimension_numbers = #tpu.dot_dimension_numbers<[1], [1], [0], [0], [0, 0, 1, 0], [], []>} : vector<24x32xf32>, vector<24x32xf32>, vector<24x24xf32> -> vector<24x24xf32>
    %64 = arith.addf %63, %43 : vector<24x24xf32>
    %cst_26 = arith.constant dense<0xFF800000> : vector<24xf32>
    %65 = vector.multi_reduction <maximumf>, %64, %cst_26 [1] : vector<24x24xf32> to vector<24xf32>
    %66 = vector.shape_cast %65 : vector<24xf32> to vector<24x1xf32>
    %67 = vector.broadcast %66 : vector<24x1xf32> to vector<24x24xf32>
    %68 = arith.subf %64, %67 : vector<24x24xf32>
    %69 = math.exp %68 : vector<24x24xf32>
    %cst_27 = arith.constant dense<0.000000e+00> : vector<24xf32>
    %70 = vector.multi_reduction <add>, %69, %cst_27 [1] : vector<24x24xf32> to vector<24xf32>
    %71 = vector.shape_cast %70 : vector<24xf32> to vector<24x1xf32>
    %72 = tpu.reciprocal %71 {approx = true} : vector<24x1xf32> -> vector<24x1xf32>
    %73 = vector.broadcast %72 : vector<24x1xf32> to vector<24x24xf32>
    %74 = arith.mulf %69, %73 : vector<24x24xf32>
    %cst_28 = arith.constant dense<0.000000e+00> : vector<24x32xf32>
    %75 = tpu.matmul %74, %62, %cst_28 {dimension_numbers = #tpu.dot_dimension_numbers<[1], [0], [0], [1], [0, 0, 1, 1], [], []>} : vector<24x24xf32>, vector<24x32xf32>, vector<24x32xf32> -> vector<24x32xf32>
    %76 = vector.extract_strided_slice %35 {offsets = [0, 64], sizes = [24, 32], strides = [1, 1]} : vector<24x128xf32> to vector<24x32xf32>
    %77 = vector.extract_strided_slice %36 {offsets = [0, 64], sizes = [24, 32], strides = [1, 1]} : vector<24x128xf32> to vector<24x32xf32>
    %78 = vector.extract_strided_slice %37 {offsets = [0, 64], sizes = [24, 32], strides = [1, 1]} : vector<24x128xf32> to vector<24x32xf32>
    %cst_29 = arith.constant dense<0.000000e+00> : vector<24x24xf32>
    %79 = tpu.matmul %76, %77, %cst_29 {dimension_numbers = #tpu.dot_dimension_numbers<[1], [1], [0], [0], [0, 0, 1, 0], [], []>} : vector<24x32xf32>, vector<24x32xf32>, vector<24x24xf32> -> vector<24x24xf32>
    %80 = arith.addf %79, %43 : vector<24x24xf32>
    %cst_30 = arith.constant dense<0xFF800000> : vector<24xf32>
    %81 = vector.multi_reduction <maximumf>, %80, %cst_30 [1] : vector<24x24xf32> to vector<24xf32>
    %82 = vector.shape_cast %81 : vector<24xf32> to vector<24x1xf32>
    %83 = vector.broadcast %82 : vector<24x1xf32> to vector<24x24xf32>
    %84 = arith.subf %80, %83 : vector<24x24xf32>
    %85 = math.exp %84 : vector<24x24xf32>
    %cst_31 = arith.constant dense<0.000000e+00> : vector<24xf32>
    %86 = vector.multi_reduction <add>, %85, %cst_31 [1] : vector<24x24xf32> to vector<24xf32>
    %87 = vector.shape_cast %86 : vector<24xf32> to vector<24x1xf32>
    %88 = tpu.reciprocal %87 {approx = true} : vector<24x1xf32> -> vector<24x1xf32>
    %89 = vector.broadcast %88 : vector<24x1xf32> to vector<24x24xf32>
    %90 = arith.mulf %85, %89 : vector<24x24xf32>
    %cst_32 = arith.constant dense<0.000000e+00> : vector<24x32xf32>
    %91 = tpu.matmul %90, %78, %cst_32 {dimension_numbers = #tpu.dot_dimension_numbers<[1], [0], [0], [1], [0, 0, 1, 1], [], []>} : vector<24x24xf32>, vector<24x32xf32>, vector<24x32xf32> -> vector<24x32xf32>
    %92 = vector.extract_strided_slice %35 {offsets = [0, 96], sizes = [24, 32], strides = [1, 1]} : vector<24x128xf32> to vector<24x32xf32>
    %93 = vector.extract_strided_slice %36 {offsets = [0, 96], sizes = [24, 32], strides = [1, 1]} : vector<24x128xf32> to vector<24x32xf32>
    %94 = vector.extract_strided_slice %37 {offsets = [0, 96], sizes = [24, 32], strides = [1, 1]} : vector<24x128xf32> to vector<24x32xf32>
    %cst_33 = arith.constant dense<0.000000e+00> : vector<24x24xf32>
    %95 = tpu.matmul %92, %93, %cst_33 {dimension_numbers = #tpu.dot_dimension_numbers<[1], [1], [0], [0], [0, 0, 1, 0], [], []>} : vector<24x32xf32>, vector<24x32xf32>, vector<24x24xf32> -> vector<24x24xf32>
    %96 = arith.addf %95, %43 : vector<24x24xf32>
    %cst_34 = arith.constant dense<0xFF800000> : vector<24xf32>
    %97 = vector.multi_reduction <maximumf>, %96, %cst_34 [1] : vector<24x24xf32> to vector<24xf32>
    %98 = vector.shape_cast %97 : vector<24xf32> to vector<24x1xf32>
    %99 = vector.broadcast %98 : vector<24x1xf32> to vector<24x24xf32>
    %100 = arith.subf %96, %99 : vector<24x24xf32>
    %101 = math.exp %100 : vector<24x24xf32>
    %cst_35 = arith.constant dense<0.000000e+00> : vector<24xf32>
    %102 = vector.multi_reduction <add>, %101, %cst_35 [1] : vector<24x24xf32> to vector<24xf32>
    %103 = vector.shape_cast %102 : vector<24xf32> to vector<24x1xf32>
    %104 = tpu.reciprocal %103 {approx = true} : vector<24x1xf32> -> vector<24x1xf32>
    %105 = vector.broadcast %104 : vector<24x1xf32> to vector<24x24xf32>
    %106 = arith.mulf %101, %105 : vector<24x24xf32>
    %cst_36 = arith.constant dense<0.000000e+00> : vector<24x32xf32>
    %107 = tpu.matmul %106, %94, %cst_36 {dimension_numbers = #tpu.dot_dimension_numbers<[1], [0], [0], [1], [0, 0, 1, 1], [], []>} : vector<24x24xf32>, vector<24x32xf32>, vector<24x32xf32> -> vector<24x32xf32>
    %108 = tpu.concatenate %59, %75, %91, %107 in 1 : vector<24x32xf32>, vector<24x32xf32>, vector<24x32xf32>, vector<24x32xf32> -> vector<24x128xf32>
    %109 = arith.addf %108, %3 : vector<24x128xf32>
    %c0_37 = arith.constant 0 : index
    %c0_38 = arith.constant 0 : index
    %c0_39 = arith.constant 0 : index
    %110 = vector.load %arg9[%c0_37, %c0_38, %c0_39] : memref<1x1x128xf32, #tpu.memory_space<vmem>>, vector<1x1x128xf32>
    %111 = vector.shape_cast %110 : vector<1x1x128xf32> to vector<1x128xf32>
    %c0_40 = arith.constant 0 : index
    %c0_41 = arith.constant 0 : index
    %c0_42 = arith.constant 0 : index
    %112 = vector.load %arg10[%c0_40, %c0_41, %c0_42] : memref<1x1x128xf32, #tpu.memory_space<vmem>>, vector<1x1x128xf32>
    %113 = vector.shape_cast %112 : vector<1x1x128xf32> to vector<1x128xf32>
    %cst_43 = arith.constant dense<0.000000e+00> : vector<24xf32>
    %114 = vector.multi_reduction <add>, %109, %cst_43 [1] : vector<24x128xf32> to vector<24xf32>
    %115 = vector.shape_cast %114 : vector<24xf32> to vector<24x1xf32>
    %cst_44 = arith.constant 1.280000e+02 : f32
    %116 = vector.broadcast %cst_44 : f32 to vector<24x1xf32>
    %117 = arith.divf %115, %116 : vector<24x1xf32>
    %118 = vector.broadcast %117 : vector<24x1xf32> to vector<24x128xf32>
    %119 = arith.subf %109, %118 : vector<24x128xf32>
    %120 = arith.mulf %119, %119 : vector<24x128xf32>
    %cst_45 = arith.constant dense<0.000000e+00> : vector<24xf32>
    %121 = vector.multi_reduction <add>, %120, %cst_45 [1] : vector<24x128xf32> to vector<24xf32>
    %122 = vector.shape_cast %121 : vector<24xf32> to vector<24x1xf32>
    %cst_46 = arith.constant 1.280000e+02 : f32
    %123 = vector.broadcast %cst_46 : f32 to vector<24x1xf32>
    %124 = arith.divf %122, %123 : vector<24x1xf32>
    %cst_47 = arith.constant 9.99999974E-6 : f32
    %125 = vector.broadcast %cst_47 : f32 to vector<24x1xf32>
    %126 = arith.addf %124, %125 : vector<24x1xf32>
    %127 = math.rsqrt %126 : vector<24x1xf32>
    %128 = vector.broadcast %127 : vector<24x1xf32> to vector<24x128xf32>
    %129 = arith.mulf %119, %128 : vector<24x128xf32>
    %130 = vector.broadcast %111 : vector<1x128xf32> to vector<24x128xf32>
    %131 = arith.mulf %129, %130 : vector<24x128xf32>
    %132 = vector.broadcast %113 : vector<1x128xf32> to vector<24x128xf32>
    %133 = arith.addf %131, %132 : vector<24x128xf32>
    %c0_48 = arith.constant 0 : index
    %c0_49 = arith.constant 0 : index
    %c0_50 = arith.constant 0 : index
    %134 = vector.load %arg11[%c0_48, %c0_49, %c0_50] : memref<1x128x128xf32, #tpu.memory_space<vmem>>, vector<1x128x128xf32>
    %135 = vector.shape_cast %134 : vector<1x128x128xf32> to vector<128x128xf32>
    %cst_51 = arith.constant dense<0.000000e+00> : vector<24x128xf32>
    %136 = tpu.matmul %133, %135, %cst_51 {dimension_numbers = #tpu.dot_dimension_numbers<[1], [0], [0], [1], [0, 0, 1, 1], [], []>} : vector<24x128xf32>, vector<128x128xf32>, vector<24x128xf32> -> vector<24x128xf32>
    %c0_52 = arith.constant 0 : index
    %c0_53 = arith.constant 0 : index
    %c0_54 = arith.constant 0 : index
    %137 = vector.load %arg12[%c0_52, %c0_53, %c0_54] : memref<1x1x128xf32, #tpu.memory_space<vmem>>, vector<1x1x128xf32>
    %138 = vector.shape_cast %137 : vector<1x1x128xf32> to vector<1x128xf32>
    %139 = vector.broadcast %138 : vector<1x128xf32> to vector<24x128xf32>
    %140 = arith.addf %136, %139 : vector<24x128xf32>
    %cst_55 = arith.constant 5.000000e-01 : f32
    %141 = vector.broadcast %cst_55 : f32 to vector<24x128xf32>
    %142 = arith.mulf %141, %140 : vector<24x128xf32>
    %cst_56 = arith.constant 0.707106769 : f32
    %143 = vector.broadcast %cst_56 : f32 to vector<24x128xf32>
    %144 = arith.mulf %140, %143 : vector<24x128xf32>
    %145 = math.erf %144 : vector<24x128xf32>
    %cst_57 = arith.constant 1.000000e+00 : f32
    %146 = vector.broadcast %cst_57 : f32 to vector<24x128xf32>
    %147 = arith.addf %146, %145 : vector<24x128xf32>
    %148 = arith.mulf %142, %147 : vector<24x128xf32>
    %c0_58 = arith.constant 0 : index
    %c0_59 = arith.constant 0 : index
    %c0_60 = arith.constant 0 : index
    %149 = vector.load %arg13[%c0_58, %c0_59, %c0_60] : memref<1x128x128xf32, #tpu.memory_space<vmem>>, vector<1x128x128xf32>
    %150 = vector.shape_cast %149 : vector<1x128x128xf32> to vector<128x128xf32>
    %cst_61 = arith.constant dense<0.000000e+00> : vector<24x128xf32>
    %151 = tpu.matmul %148, %150, %cst_61 {dimension_numbers = #tpu.dot_dimension_numbers<[1], [0], [0], [1], [0, 0, 1, 1], [], []>} : vector<24x128xf32>, vector<128x128xf32>, vector<24x128xf32> -> vector<24x128xf32>
    %c0_62 = arith.constant 0 : index
    %c0_63 = arith.constant 0 : index
    %c0_64 = arith.constant 0 : index
    %152 = vector.load %arg14[%c0_62, %c0_63, %c0_64] : memref<1x1x128xf32, #tpu.memory_space<vmem>>, vector<1x1x128xf32>
    %153 = vector.shape_cast %152 : vector<1x1x128xf32> to vector<1x128xf32>
    %154 = vector.broadcast %153 : vector<1x128xf32> to vector<24x128xf32>
    %155 = arith.addf %151, %154 : vector<24x128xf32>
    %156 = arith.addf %155, %109 : vector<24x128xf32>
    %c0_65 = arith.constant 0 : index
    %c0_66 = arith.constant 0 : index
    %157 = vector.load %arg21[%c0_65, %c0_66] : memref<24x128xf32, #tpu.memory_space<vmem>>, vector<24x128xf32>
    tpu.vector_store %arg21[%c0_65, %c0_66], %156 {strides = array<i32>} : memref<24x128xf32, #tpu.memory_space<vmem>>, vector<24x128xf32>,
    %c1_i32 = arith.constant 1 : i32
    %158 = arith.cmpi eq, %arg1, %c1_i32 : i32
    %159 = arith.extui %158 : i1 to i32
    %c0_i32_67 = arith.constant 0 : i32
    %160 = arith.cmpi ne, %159, %c0_i32_67 : i32
    scf.if %160 {
      %c0_68 = arith.constant 0 : index
      %c0_69 = arith.constant 0 : index
      %c0_70 = arith.constant 0 : index
      %161 = vector.load %arg19[%c0_68, %c0_69, %c0_70] : memref<1x24x128xf32, #tpu.memory_space<vmem>>, vector<1x24x128xf32>
      %162 = vector.shape_cast %161 : vector<1x24x128xf32> to vector<24x128xf32>
      %163 = vector.shape_cast %156 : vector<24x128xf32> to vector<1x24x128xf32>
      tpu.vector_store %arg19[%c0_68, %c0_69, %c0_70], %163 {strides = array<i32>} : memref<1x24x128xf32, #tpu.memory_space<vmem>>, vector<1x24x128xf32>,
      %164 = vector.extract_strided_slice %156 {offsets = [0, 0], sizes = [1, 128], strides = [1, 1]} : vector<24x128xf32> to vector<1x128xf32>
      %c0_71 = arith.constant 0 : index
      %c0_72 = arith.constant 0 : index
      %165 = vector.load %arg15[%c0_71, %c0_72] : memref<128x64xf32, #tpu.memory_space<vmem>>, vector<128x64xf32>
      %cst_73 = arith.constant dense<0.000000e+00> : vector<1x64xf32>
      %166 = tpu.matmul %164, %165, %cst_73 {dimension_numbers = #tpu.dot_dimension_numbers<[1], [0], [0], [1], [0, 0, 1, 1], [], []>} : vector<1x128xf32>, vector<128x64xf32>, vector<1x64xf32> -> vector<1x64xf32>
      %c0_74 = arith.constant 0 : index
      %c0_75 = arith.constant 0 : index
      %167 = vector.load %arg16[%c0_74, %c0_75] : memref<1x64xf32, #tpu.memory_space<vmem>>, vector<1x64xf32>
      %168 = arith.addf %166, %167 : vector<1x64xf32>
      %cst_76 = arith.constant 5.000000e-01 : f32
      %169 = vector.broadcast %cst_76 : f32 to vector<1x64xf32>
      %170 = arith.mulf %169, %168 : vector<1x64xf32>
      %cst_77 = arith.constant 0.707106769 : f32
      %171 = vector.broadcast %cst_77 : f32 to vector<1x64xf32>
      %172 = arith.mulf %168, %171 : vector<1x64xf32>
      %173 = math.erf %172 : vector<1x64xf32>
      %cst_78 = arith.constant 1.000000e+00 : f32
      %174 = vector.broadcast %cst_78 : f32 to vector<1x64xf32>
      %175 = arith.addf %174, %173 : vector<1x64xf32>
      %176 = arith.mulf %170, %175 : vector<1x64xf32>
      %c0_79 = arith.constant 0 : index
      %c0_80 = arith.constant 0 : index
      %177 = vector.load %arg17[%c0_79, %c0_80] : memref<64x16xf32, #tpu.memory_space<vmem>>, vector<64x16xf32>
      %cst_81 = arith.constant dense<0.000000e+00> : vector<1x16xf32>
      %178 = tpu.matmul %176, %177, %cst_81 {dimension_numbers = #tpu.dot_dimension_numbers<[1], [0], [0], [1], [0, 0, 1, 1], [], []>} : vector<1x64xf32>, vector<64x16xf32>, vector<1x16xf32> -> vector<1x16xf32>
      %c0_82 = arith.constant 0 : index
      %c0_83 = arith.constant 0 : index
      %179 = vector.load %arg18[%c0_82, %c0_83] : memref<1x16xf32, #tpu.memory_space<vmem>>, vector<1x16xf32>
      %180 = arith.addf %178, %179 : vector<1x16xf32>
      %c0_84 = arith.constant 0 : index
      %c0_85 = arith.constant 0 : index
      %c0_86 = arith.constant 0 : index
      %181 = vector.load %arg20[%c0_84, %c0_85, %c0_86] : memref<1x1x16xf32, #tpu.memory_space<vmem>>, vector<1x1x16xf32>
      %182 = vector.shape_cast %181 : vector<1x1x16xf32> to vector<1x16xf32>
      %183 = vector.shape_cast %180 : vector<1x16xf32> to vector<1x1x16xf32>
      tpu.vector_store %arg20[%c0_84, %c0_85, %c0_86], %183 {strides = array<i32>} : memref<1x1x16xf32, #tpu.memory_space<vmem>>, vector<1x1x16xf32>,
    } else {
    }
    return
  }
  func.func @transform_0(%arg0: i32, %arg1: i32) -> (i32, i32, i32) {
    %c0_i32 = arith.constant 0 : i32
    %c0_i32_0 = arith.constant 0 : i32
    %c0_i32_1 = arith.constant 0 : i32
    return %arg0, %c0_i32, %c0_i32_0 : i32, i32, i32
  }
  func.func @transform_1(%arg0: i32, %arg1: i32) -> (i32, i32) {
    %c0_i32 = arith.constant 0 : i32
    %c0_i32_0 = arith.constant 0 : i32
    %c0_i32_1 = arith.constant 0 : i32
    return %c0_i32, %c0_i32_0 : i32, i32
  }
  func.func @transform_2(%arg0: i32, %arg1: i32) -> (i32, i32) {
    %c0_i32 = arith.constant 0 : i32
    %c0_i32_0 = arith.constant 0 : i32
    %c0_i32_1 = arith.constant 0 : i32
    return %c0_i32, %c0_i32_0 : i32, i32
  }
  func.func @transform_3(%arg0: i32, %arg1: i32) -> (i32, i32, i32) {
    %c0_i32 = arith.constant 0 : i32
    %c0_i32_0 = arith.constant 0 : i32
    %c0_i32_1 = arith.constant 0 : i32
    return %arg1, %c0_i32, %c0_i32_0 : i32, i32, i32
  }
  func.func @transform_4(%arg0: i32, %arg1: i32) -> (i32, i32, i32) {
    %c0_i32 = arith.constant 0 : i32
    %c0_i32_0 = arith.constant 0 : i32
    %c0_i32_1 = arith.constant 0 : i32
    return %arg1, %c0_i32, %c0_i32_0 : i32, i32, i32
  }
  func.func @transform_5(%arg0: i32, %arg1: i32) -> (i32, i32, i32) {
    %c0_i32 = arith.constant 0 : i32
    %c0_i32_0 = arith.constant 0 : i32
    %c0_i32_1 = arith.constant 0 : i32
    return %arg1, %c0_i32, %c0_i32_0 : i32, i32, i32
  }
  func.func @transform_6(%arg0: i32, %arg1: i32) -> (i32, i32, i32) {
    %c0_i32 = arith.constant 0 : i32
    %c0_i32_0 = arith.constant 0 : i32
    %c0_i32_1 = arith.constant 0 : i32
    return %arg1, %c0_i32, %c0_i32_0 : i32, i32, i32
  }
  func.func @transform_7(%arg0: i32, %arg1: i32) -> (i32, i32, i32) {
    %c0_i32 = arith.constant 0 : i32
    %c0_i32_0 = arith.constant 0 : i32
    %c0_i32_1 = arith.constant 0 : i32
    return %arg1, %c0_i32, %c0_i32_0 : i32, i32, i32
  }
  func.func @transform_8(%arg0: i32, %arg1: i32) -> (i32, i32, i32) {
    %c0_i32 = arith.constant 0 : i32
    %c0_i32_0 = arith.constant 0 : i32
    %c0_i32_1 = arith.constant 0 : i32
    return %arg1, %c0_i32, %c0_i32_0 : i32, i32, i32
  }
  func.func @transform_9(%arg0: i32, %arg1: i32) -> (i32, i32, i32) {
    %c0_i32 = arith.constant 0 : i32
    %c0_i32_0 = arith.constant 0 : i32
    %c0_i32_1 = arith.constant 0 : i32
    return %arg1, %c0_i32, %c0_i32_0 : i32, i32, i32
  }
  func.func @transform_10(%arg0: i32, %arg1: i32) -> (i32, i32, i32) {
    %c0_i32 = arith.constant 0 : i32
    %c0_i32_0 = arith.constant 0 : i32
    %c0_i32_1 = arith.constant 0 : i32
    return %arg1, %c0_i32, %c0_i32_0 : i32, i32, i32
  }
  func.func @transform_11(%arg0: i32, %arg1: i32) -> (i32, i32, i32) {
    %c0_i32 = arith.constant 0 : i32
    %c0_i32_0 = arith.constant 0 : i32
    %c0_i32_1 = arith.constant 0 : i32
    return %arg1, %c0_i32, %c0_i32_0 : i32, i32, i32
  }
  func.func @transform_12(%arg0: i32, %arg1: i32) -> (i32, i32, i32) {
    %c0_i32 = arith.constant 0 : i32
    %c0_i32_0 = arith.constant 0 : i32
    %c0_i32_1 = arith.constant 0 : i32
    return %arg1, %c0_i32, %c0_i32_0 : i32, i32, i32
  }
  func.func @transform_13(%arg0: i32, %arg1: i32) -> (i32, i32) {
    %c0_i32 = arith.constant 0 : i32
    %c0_i32_0 = arith.constant 0 : i32
    %c0_i32_1 = arith.constant 0 : i32
    return %c0_i32, %c0_i32_0 : i32, i32
  }
  func.func @transform_14(%arg0: i32, %arg1: i32) -> (i32, i32) {
    %c0_i32 = arith.constant 0 : i32
    %c0_i32_0 = arith.constant 0 : i32
    %c0_i32_1 = arith.constant 0 : i32
    return %c0_i32, %c0_i32_0 : i32, i32
  }
  func.func @transform_15(%arg0: i32, %arg1: i32) -> (i32, i32) {
    %c0_i32 = arith.constant 0 : i32
    %c0_i32_0 = arith.constant 0 : i32
    %c0_i32_1 = arith.constant 0 : i32
    return %c0_i32, %c0_i32_0 : i32, i32
  }
  func.func @transform_16(%arg0: i32, %arg1: i32) -> (i32, i32) {
    %c0_i32 = arith.constant 0 : i32
    %c0_i32_0 = arith.constant 0 : i32
    %c0_i32_1 = arith.constant 0 : i32
    return %c0_i32, %c0_i32_0 : i32, i32
  }
  func.func @transform_17(%arg0: i32, %arg1: i32) -> (i32, i32, i32) {
    %c0_i32 = arith.constant 0 : i32
    %c0_i32_0 = arith.constant 0 : i32
    %c0_i32_1 = arith.constant 0 : i32
    return %arg0, %c0_i32, %c0_i32_0 : i32, i32, i32
  }
  func.func @transform_18(%arg0: i32, %arg1: i32) -> (i32, i32, i32) {
    %c0_i32 = arith.constant 0 : i32
    %c0_i32_0 = arith.constant 0 : i32
    %c0_i32_1 = arith.constant 0 : i32
    return %arg0, %c0_i32, %c0_i32_0 : i32, i32, i32
  }
}

</mosaic_0001>

<bundles_post_ra>
// kernel: vision_transformer_forward.1
= control target key start
LH: loop header
LB: loop body
LE: loop exit
PB: predicated region body
PF: predicated region fallthrough
CT: control target
= control target key end

     0   :  { %s3332_s0 = inlined_call_operand.vmem [shape: f32[2,24,48], index: 0, kind: input, shape index: {}]   ;;  %s3333_s1 = inlined_call_operand.vmem [shape: f32[48,128], index: 1, kind: input, shape index: {}]   ;;  %s3334_s2 = inlined_call_operand.vmem [shape: f32[24,128], index: 2, kind: input, shape index: {}]   ;;  %s3335_s3 = inlined_call_operand.vmem [shape: f32[2,1,128], index: 3, kind: input, shape index: {}]   ;;  %s3336_s4 = inlined_call_operand.vmem [shape: f32[2,1,128], index: 4, kind: input, shape index: {}]   ;;  %s3337_s5 = inlined_call_operand.vmem [shape: f32[2,128,384], index: 5, kind: input, shape index: {}]   ;;  %s3338_s6 = inlined_call_operand.vmem [shape: f32[2,1,384], index: 6, kind: input, shape index: {}]   ;;  %s3339_s7 = inlined_call_operand.vmem [shape: f32[2,1,128], index: 7, kind: input, shape index: {}]   ;;  %s3340_s8 = inlined_call_operand.vmem [shape: f32[2,1,128], index: 8, kind: input, shape index: {}]   ;;  %s3341_s9 = inlined_call_operand.vmem [shape: f32[2,128,128], index: 9, kind: input, shape index: {}]   ;;  %s3342_s10 = inlined_call_operand.vmem [shape: f32[2,1,128], index: 10, kind: input, shape index: {}]   ;;  %s3343_s11 = inlined_call_operand.vmem [shape: f32[2,128,128], index: 11, kind: input, shape index: {}]   ;;  %s3344_s12 = inlined_call_operand.vmem [shape: f32[2,1,128], index: 12, kind: input, shape index: {}]   ;;  %s3345_s13 = inlined_call_operand.vmem [shape: f32[128,64], index: 13, kind: input, shape index: {}]   ;;  %s3346_s14 = inlined_call_operand.vmem [shape: f32[1,64], index: 14, kind: input, shape index: {}]   ;;  %s3347_s15 = inlined_call_operand.vmem [shape: f32[64,16], index: 15, kind: input, shape index: {}]   ;;  %s3348_s16 = inlined_call_operand.vmem [shape: f32[1,16], index: 16, kind: input, shape index: {}]   ;;  %s3349_s17 = inlined_call_operand.vmem [shape: f32[2,24,128], index: 17, kind: output, shape index: {0}]   ;;  %s3350_s18 = inlined_call_operand.hbm [shape: f32[2,1,16], index: 18, kind: output, shape index: {1}]  }
   0x1   :  { %3368 = sst [smem:[#allocation18_spill]] %s3332_s0 }
   0x2   :  { %3369 = sst [smem:[#allocation19_spill]] %s3333_s1 }
   0x3   :  { %3370 = sst [smem:[#allocation20_spill]] %s3334_s2 }
   0x4   :  { %3371 = sst [smem:[#allocation21_spill]] %s3336_s4 }
   0x5   :  { %3372 = sst [smem:[#allocation22_spill]] %s3337_s5 }
   0x6   :  { %3373 = sst [smem:[#allocation23_spill]] %s3338_s6 }
   0x7   :  { %3374 = sst [smem:[#allocation24_spill]] %s3345_s13 }
   0x8   :  { %3375 = sst [smem:[#allocation25_spill]] %s3346_s14 }
   0x9   :  { %3376 = sst [smem:[#allocation26_spill]] %s3347_s15 }
   0xa   :  { %3377 = sst [smem:[#allocation27_spill]] %s3348_s16 }
   0xb   :  { %3378 = sst [smem:[#allocation28_spill]] %s3350_s18 }
   0xc   :  { %24 = vsyncpa [#allocation4], 0 }
   0xd   :  { %26 = vsyncpa [#allocation4 + $0x1], 0  ;;  %s2667_s27 = smov 0   ;;  %s2669_s28 = smov 0  }
   0xe   :  { %s2671_s29 = smov 0   ;;  %s2673_s30 = smov 0  }
   0xf   :  { %s2675_s0 = smov 0   ;;  %s2677_s19 = smov 0  }
  0x10   :  { %s2679_s1 = smov 0   ;;  %s2681_s20 = smov 0  }
  0x11 LB: > { %3379 = sst [smem:[#allocation6_spill]] %s2537_s27  ;;  %s2224_s21 = sadd.s32 4294967295, %s2565_s20   ;;  %s2565_s20 = sphi %s2681_s20, %s32_s20   ;;  %s2561_s1 = sphi %s2679_s1, %s3427_s1   ;;  %s2557_s19 = sphi %s2677_s19, %s3426_s19   ;;  %s2553_s0 = sphi %s2675_s0, %s3425_s0   ;;  %s2549_s30 = sphi %s2673_s30, %s3424_s30   ;;  %s2545_s29 = sphi %s2671_s29, %s3423_s29   ;;  %s2541_s28 = sphi %s2669_s28, %s3429_s28   ;;  %s2537_s27 = sphi %s2667_s27, %s3428_s27  }
  0x12   : > { %3380 = sst [smem:[#allocation7_spill]] %s2545_s29  ;;  %s2225_s22 = sadd.s32 4294967294, %s2565_s20  }
  0x13   : > { %3381 = sst [smem:[#allocation8_spill]] %s2549_s30  ;;  %s41_s2 = sadd.s32 1, %s2557_s19 }
  0x14   : > { %3382 = sst [smem:[#allocation9_spill]] %s2553_s0  ;;  %p42_p0 = scmp.ge.s32.totalorder %s41_s2, 2 }
  0x15   : > { %3383 = sst [smem:[#allocation10_spill]] %s2557_s19  ;;  %s44_s23 = sadd.s32 1, %s2561_s1 }
  0x16   : > { %3384 = sst [smem:[#allocation11_spill]] %s2561_s1  ;;  %p499_p1 = scmp.ne.s32.totalorder %s2545_s29, %s2541_s28 }
  0x17   : > { %3385 = sst [smem:[#allocation12_spill]] %s2565_s20  ;;  %p500_p2 = scmp.eq.s32.totalorder %s2224_s21, 3 }
  0x18   : > { %s3431_s2 = smov (%p42_p0, %s41_s2), 0  ;;  %s3433_s23 = smov (!%p42_p0, %s44_s23), %s2561_s1 }
  0x19   : > { %3386 = sst [smem:[#allocation13_spill]] %s3431_s2  ;;  %p2716_p3 = por %p500_p2, %p499_p1 }
  0x1a   : > { %p505_p4 = scmp.ne.s32.totalorder %s2541_s28, %s2537_s27  ;;  %p46_p5 = scmp.ge.s32.totalorder %s3433_s23, 2 }
  0x1b   : > { %s3387_s24 = scalar_select %p2716_p3, 1, 0 }
  0x1c   : > { %p506_p6 = scmp.eq.s32.totalorder %s2225_s22, 3  ;;  %p2228_p7 = scmp.ge.s32.totalorder %s2565_s20, 1 }
  0x1d   : > { %3388 = sst [smem:[#allocation14_spill]] %s3387_s24  ;;  %p617_p8 = scmp.lt.s32.totalorder %s2565_s20, 5 }
  0x1e   : > { %s3435_s23 = smov (%p46_p5, %s3433_s23), 0  ;;  %p2726_p9 = por %p506_p6, %p505_p4 }
  0x1f   : > { %3389 = sst [smem:[#allocation15_spill]] %s3435_s23  ;;  %p618_p10 = pnand %p2228_p7, %p617_p8 }
  0x20   : > { %s3390_s25 = scalar_select %p2726_p9, 1, 0 }
  0x21   : > { %s486_s26 = ssub.s32 %s2561_s1, %s3435_s23  ;;  %s489_s21 = sadd.s32 1, %s2545_s29 }
  0x22   : > { %3391 = sst [smem:[#allocation16_spill]] %s3390_s25  ;;  %p487_p11 = scmp.eq.s32.totalorder %s486_s26, 0 }
  0x23   : > { %621 = sbr.rel (%p618_p10) target bundleno = 2431 (0x97f), region = 88  ;;  %p712_p12 = scmp.lt.s32.totalorder (!%p618_p10), %s2553_s0, 1 }
  0x24   : > { %s2734_s2 = scalar_select %p487_p11, %s2545_s29, %s489_s21  }
  0x25   : > { %p717_p13 = scmp.lt.s32.totalorder (!%p618_p10), %s2549_s30, 1  ;;  %s3394_s24 = sld [smem:[#allocation18_spill]] (!%p618_p10) }
  0x26   : > { %3392 = sst [smem:[#allocation17_spill]] %s2734_s2  ;;  %s3397_s4 = sand.u32 (!%p618_p10), 1, %s2541_s28  }
  0x27   : > { %s3395_s5 = sld [smem:[#allocation22_spill]] (!%p618_p10)  ;;  %s2802_s25 = scalar_lea.vmem (!%p618_p10), [#allocation3], %s3397_s4 }
  0x28   : > { %s713_s19 = scalar_select %p712_p12, %s2553_s0, 1 }
  0x29   : > { %s2741_s27 = scalar_select %p717_p13, %s2549_s30, 1 }
  0x2a   : > { %s2298_s26 = smul.u32 24, %s713_s19  ;;  %s3396_s6 = sld [smem:[#allocation23_spill]] }
  0x2b   : > { %s2299_s0 = smul.u32 384, %s2741_s27 }
  0x2c   : > { %s2754_s18 = scalar_lea.vmem %s3394_s24, %s2298_s26  ;;  %s2300_s16 = smul.u32 3, %s2741_s27 }
  0x2d   : > { %s2765_s23 = scalar_lea.vmem %s3395_s5, %s2299_s0  ;;  %s2284_s24 = sshll.u32 %s2741_s27, 7 }
  0x2e   : > { %s2780_s14 = scalar_lea.vmem %s3341_s9, %s2284_s24  ;;  %s2789_s22 = scalar_lea.vmem %s3343_s11, %s2284_s24 }
  0x2f   : > { %s2798_s5 = scalar_lea.vmem %s3349_s17, %s2298_s26 }
  0x30   : > { %s2774_s20 = scalar_lea.vmem %s3396_s6, %s2300_s16  ;;  %s753_s16 = scalar_lea.vmem %s3344_s12, %s2741_s27 }
  0x31   : > { %s3398_s6 = sld [smem:[#allocation8_spill]] }
  0x37   : > { %p2236_p0 = scmp.ne.s32.totalorder %s3398_s6, 0 }
  0x38   : > { %s3399_s30 = sld [smem:[#allocation19_spill]] (!%p2236_p0) }
  0x39   : > { %762 = sbr.rel (%p2236_p0) target bundleno = 209 (0xd1), region = 92  ;;  %s3401_s24 = sld [smem:[#allocation20_spill]] (!%p2236_p0) }
  0x3e   : > { %s3400_s13 = smov %s3399_s30  ;;  %v771_v0 = vld [vmem:[%s3399_s30 + $0x28] sm:$0xff]  ;;  %v765_v6 = vld [vmem:[%s2754_s18 + $0x10] sm:$0xff]  ;;  %vm775_vm0 = vcmask 392192   ;;  %v763_v7 = vld [vmem:[%s2754_s18] sm:$0xff] }
  0x3f   : > { %v770_v1 = vld [vmem:[%s3400_s13 + $0x20] sm:$0xff]  ;;  %2287 = vmatpush.msra.mxu2 %v771_v0  ;;  %795 = vmatpush.msra.mxu0 %v771_v0  ;;  %v769_v2 = vld [vmem:[%s3400_s13 + $0x18] sm:$0xff]  ;;  %v768_v3 = vld [vmem:[%s3400_s13 + $0x10] sm:$0xff] }
  0x40   : > { %2286 = vmatpush.msra.mxu1 %v771_v0  ;;  %v767_v4 = vld [vmem:[%s3400_s13 + $0x8] sm:$0xff]  ;;  %v766_v5 = vld [vmem:[%s3400_s13] sm:$0xff]  ;;  %v774_v15 = vld [vmem:[%s3401_s24 + $0x10] sm:$0xff] }
  0x41   : > { %2289 = vmatpush.msra.mxu2 %v770_v1  ;;  %796 = vmatpush.msra.mxu0 %v770_v1  ;;  %v764_v8 = vld [vmem:[%s2754_s18 + $0x8] sm:$0xff]  ;;  %v772_v9 = vld [vmem:[%s3401_s24] sm:$0xff] }
  0x42   : > { %2288 = vmatpush.msra.mxu1 %v770_v1  ;;  %v773_v10 = vld [vmem:[%s3401_s24 + $0x8] sm:$0xff] }
  0x43   : > { %2291 = vmatpush.msra.mxu2 %v769_v2  ;;  %797 = vmatpush.msra.mxu0 %v769_v2 }
  0x44   : > { %2290 = vmatpush.msra.mxu1 %v769_v2 }
  0x45   : > { %2293 = vmatpush.msra.mxu2 %v768_v3  ;;  %798 = vmatpush.msra.mxu0 %v768_v3 }
  0x46   : > { %2292 = vmatpush.msra.mxu1 %v768_v3 }
  0x47   : > { %2295 = vmatpush.msra.mxu2 %v767_v4  ;;  %799 = vmatpush.msra.mxu0 %v767_v4 }
  0x48   : > { %2294 = vmatpush.msra.mxu1 %v767_v4 }
  0x49   : > { %2297 = vmatpush.msra.mxu2 %v766_v5  ;;  %800 = vmatpush.msra.mxu0 %v766_v5 }
  0x4a   : > { %2239 = vmatmul.msk.f32.vlgmr.msra.gmra.mxu2 %vm775_vm0, %v765_v6  ;;  %2296 = vmatpush.msra.mxu1 %v766_v5 }
  0x4b   : > { %2237 = vmatmul.msk.f32.vlgmr.msra.gmra.mxu0 %vm775_vm0, %v763_v7  ;;  %2238 = vmatmul.msk.f32.vlgmr.msra.gmra.mxu1 %vm775_vm0, %v764_v8 }
  0xc8   : > { %v802_v11 = vpop.f32.mrf.mxu0  ;;  %v805_v12 = vpop.f32.mrf.mxu1 }
  0xc9   : > { %v803_v13 = vadd.f32 %v802_v11, %v772_v9  ;;  %v806_v14 = vadd.f32 %v805_v12, %v773_v10 }
  0xcb   : > { %811 = vst [vmem:[#allocation2 + $0x10] sm:$0xff] %v803_v13 }
  0xcc   : > { %812 = vst [vmem:[#allocation2] sm:$0xff] %v806_v14 }
  0xcd   : > { %v808_v16 = vpop.f32.mrf.mxu2 }
  0xce   : > { %v809_v17 = vadd.f32 %v808_v16, %v774_v15 }
  0xd0   : > { %813 = vst [vmem:[#allocation2 + $0x8] sm:$0xff] %v809_v17 }
  0xd1 PF: > { %v2567_v21 = vmov 128.0   ;;  %v943_v26 = vld [vmem:[%s2765_s23 + $0x168] sm:$0xff]  ;;  %v944_v27 = vld [vmem:[%s2765_s23 + $0x170] sm:$0xff]  ;;  %v945_v28 = vld [vmem:[%s2765_s23 + $0x178] sm:$0xff]  ;;  %s3402_s26 = scalar_lea.vmem %s3335_s3, %s2741_s27  ;;  %s3403_s4 = sld [smem:[#allocation21_spill]]  ;;  %vm1036_vm11 = vcmask 261120  }
  0xd2   : > { %v814_v18 = vld [vmem:[#allocation2 + $0x10] sm:$0xff]  ;;  %2398 = vrcp.f32 %v2567_v21  ;;  %954 = vmatpush.msra.mxu0 %v943_v26  ;;  %980 = vmatpush.msra.mxu1 %v944_v27  ;;  %v941_v30 = vld [vmem:[%s2765_s23 + $0x158] sm:$0xff]  ;;  %v942_v31 = vld [vmem:[%s2765_s23 + $0x160] sm:$0xff]  ;;  %s2568_s15 = smov 96   ;;  %s2569_s30 = smov 64   ;;  %vm1081_vm13 = vcmask 195584  }
  0xd3   : > { %819 = vadd.xlane.f32.xlu0 %v814_v18  ;;  %v815_v20 = vld [vmem:[#allocation2] sm:$0xff]  ;;  %v940_v29 = vld [vmem:[%s2765_s23 + $0x150] sm:$0xff]  ;;  %1006 = vmatpush.msra.mxu2 %v945_v28  ;;  %v937_v46 = vld [vmem:[%s2765_s23 + $0x138] sm:$0xff]  ;;  %vm1577_vm14 = vcmask 785408   ;;  %vm1573_vm15 = vcmask 523264   ;;  %s3405_s1 = scalar_lea.vmem %s3339_s7, %s2741_s27  ;;  %s3407_s29 = scalar_lea.vmem %s3342_s10, %s2741_s27 }
  0xd4   : > { %955 = vmatpush.msra.mxu0 %v940_v29  ;;  %981 = vmatpush.msra.mxu1 %v941_v30  ;;  %v938_v47 = vld [vmem:[%s2765_s23 + $0x140] sm:$0xff]  ;;  %v939_v48 = vld [vmem:[%s2765_s23 + $0x148] sm:$0xff]  ;;  %v936_v51 = vld [vmem:[%s2765_s23 + $0x130] sm:$0xff] }
  0xd5   : > { %1007 = vmatpush.msra.mxu2 %v942_v31  ;;  %v934_v49 = vld [vmem:[%s2765_s23 + $0x120] sm:$0xff]  ;;  %v935_v50 = vld [vmem:[%s2765_s23 + $0x128] sm:$0xff]  ;;  %v932_v53 = vld [vmem:[%s2765_s23 + $0x110] sm:$0xff] }
  0xd6   : > { %956 = vmatpush.msra.mxu0 %v937_v46  ;;  %982 = vmatpush.msra.mxu1 %v938_v47  ;;  %v931_v52 = vld [vmem:[%s2765_s23 + $0x108] sm:$0xff]  ;;  %v933_v54 = vld [vmem:[%s2765_s23 + $0x118] sm:$0xff]  ;;  %v928_v55 = vld [vmem:[%s2765_s23 + $0xf0] sm:$0xff] }
  0xd7   : > { %v816_v19 = vld [vmem:[#allocation2 + $0x8] sm:$0xff]  ;;  %1008 = vmatpush.msra.mxu2 %v939_v48  ;;  %v929_v56 = vld [vmem:[%s2765_s23 + $0xf8] sm:$0xff]  ;;  %v930_v57 = vld [vmem:[%s2765_s23 + $0x100] sm:$0xff]  ;;  %s3404_s19 = scalar_lea.vmem %s3403_s4, %s2741_s27  ;;  %s3408_s4 = sld [smem:[#allocation8_spill]] }
  0xd8   : > { %823 = vadd.xlane.f32.xlu1 %v816_v19  ;;  %v2399_v22 = vpop.eup %2398  ;;  %957 = vmatpush.msra.mxu0 %v934_v49  ;;  %v925_v58 = vld [vmem:[%s2765_s23 + $0xd8] sm:$0xff]  ;;  %v926_v59 = vld [vmem:[%s2765_s23 + $0xe0] sm:$0xff]  ;;  %v927_v60 = vld [vmem:[%s2765_s23 + $0xe8] sm:$0xff] }
  0xd9   : > { %v826_v23 = vmul.f32 128.0, %v2399_v22  ;;  %vm830_vm1 = vweird.f32 %v2399_v22  ;;  %983 = vmatpush.msra.mxu1 %v935_v50  ;;  %1009 = vmatpush.msra.mxu2 %v936_v51  ;;  %v922_v61 = vld [vmem:[%s2765_s23 + $0xc0] sm:$0xff]  ;;  %v923_v62 = vld [vmem:[%s2765_s23 + $0xc8] sm:$0xff]  ;;  %v924_v63 = vld [vmem:[%s2765_s23 + $0xd0] sm:$0xff] }
  0xda   : > { %958 = vmatpush.msra.mxu0 %v931_v52  ;;  %v919_v0 = vld [vmem:[%s2765_s23 + $0xa8] sm:$0xff]  ;;  %v920_v1 = vld [vmem:[%s2765_s23 + $0xb0] sm:$0xff]  ;;  %v921_v2 = vld [vmem:[%s2765_s23 + $0xb8] sm:$0xff] }
  0xdb   : > { %821 = vadd.xlane.f32.xlu0 %v815_v20  ;;  %v827_v24 = vsub.f32 1.0, %v826_v23  ;;  %984 = vmatpush.msra.mxu1 %v932_v53  ;;  %v916_v3 = vld [vmem:[%s2765_s23 + $0x90] sm:$0xff]  ;;  %v917_v4 = vld [vmem:[%s2765_s23 + $0x98] sm:$0xff]  ;;  %v918_v5 = vld [vmem:[%s2765_s23 + $0xa0] sm:$0xff] }
  0xdc   : > { %1010 = vmatpush.msra.mxu2 %v933_v54  ;;  %959 = vmatpush.msra.mxu0 %v928_v55  ;;  %v913_v6 = vld [vmem:[%s2765_s23 + $0x78] sm:$0xff]  ;;  %v914_v7 = vld [vmem:[%s2765_s23 + $0x80] sm:$0xff]  ;;  %v915_v8 = vld [vmem:[%s2765_s23 + $0x88] sm:$0xff] }
  0xdd   : > { %v828_v25 = vmul.f32 %v2399_v22, %v827_v24  ;;  %985 = vmatpush.msra.mxu1 %v929_v56  ;;  %v910_v9 = vld [vmem:[%s2765_s23 + $0x60] sm:$0xff]  ;;  %v911_v10 = vld [vmem:[%s2765_s23 + $0x68] sm:$0xff]  ;;  %v912_v11 = vld [vmem:[%s2765_s23 + $0x70] sm:$0xff]  ;;  %p2279_p1 = scmp.ne.s32.totalorder %s3408_s4, 1 }
  0xde   : > { %1011 = vmatpush.msra.mxu2 %v930_v57  ;;  %960 = vmatpush.msra.mxu0 %v925_v58  ;;  %v907_v12 = vld [vmem:[%s2765_s23 + $0x48] sm:$0xff]  ;;  %v908_v13 = vld [vmem:[%s2765_s23 + $0x50] sm:$0xff]  ;;  %v909_v14 = vld [vmem:[%s2765_s23 + $0x58] sm:$0xff]  ;;  %s3411_s4 = sld [smem:[#allocation26_spill]] (!%p2279_p1) }
  0xdf   : > { %v829_v32 = vadd.f32 %v2399_v22, %v828_v25  ;;  %986 = vmatpush.msra.mxu1 %v926_v59  ;;  %v904_v15 = vld [vmem:[%s2765_s23 + $0x30] sm:$0xff]  ;;  %v905_v16 = vld [vmem:[%s2765_s23 + $0x38] sm:$0xff]  ;;  %v906_v17 = vld [vmem:[%s2765_s23 + $0x40] sm:$0xff] }
  0xe0   : > { %1012 = vmatpush.msra.mxu2 %v927_v60  ;;  %961 = vmatpush.msra.mxu0 %v922_v61  ;;  %v898_v21 = vld [vmem:[%s2765_s23] sm:$0xff]  ;;  %v900_v23 = vld [vmem:[%s2765_s23 + $0x10] sm:$0xff] }
  0xe1   : > { %v2841_v33 = vsel %vm830_vm1, %v2399_v22, %v829_v32  ;;  %987 = vmatpush.msra.mxu1 %v923_v62  ;;  %v899_v22 = vld [vmem:[%s2765_s23 + $0x8] sm:$0xff]  ;;  %v2393_v49 = vld [vmem:[%s3404_s19] ss:$0 sm:$0xff]  ;;  %s3409_s19 = sld [smem:[#allocation24_spill]] (!%p2279_p1) }
  0xe2   : > { %1013 = vmatpush.msra.mxu2 %v924_v63  ;;  %962 = vmatpush.msra.mxu0 %v919_v0 }
  0xe3   : > { %988 = vmatpush.msra.mxu1 %v920_v1 }
  0xe4   : > { %1014 = vmatpush.msra.mxu2 %v921_v2  ;;  %963 = vmatpush.msra.mxu0 %v916_v3 }
  0xe5   : > { %989 = vmatpush.msra.mxu1 %v917_v4 }
  0xe6   : > { %1015 = vmatpush.msra.mxu2 %v918_v5  ;;  %964 = vmatpush.msra.mxu0 %v913_v6 }
  0xe7   : > { %990 = vmatpush.msra.mxu1 %v914_v7 }
  0xe8   : > { %1016 = vmatpush.msra.mxu2 %v915_v8  ;;  %965 = vmatpush.msra.mxu0 %v910_v9 }
  0xe9   : > { %991 = vmatpush.msra.mxu1 %v911_v10 }
  0xea   : > { %1017 = vmatpush.msra.mxu2 %v912_v11  ;;  %966 = vmatpush.msra.mxu0 %v907_v12 }
  0xeb   : > { %992 = vmatpush.msra.mxu1 %v908_v13 }
  0xec   : > { %1018 = vmatpush.msra.mxu2 %v909_v14  ;;  %967 = vmatpush.msra.mxu0 %v904_v15 }
  0xed   : > { %993 = vmatpush.msra.mxu1 %v905_v16 }
  0xee   : > { %1019 = vmatpush.msra.mxu2 %v906_v17 }
 0x146   : > { %v820_v34 = vpop.xlane.xlu0 %819 }
 0x147   : > { %v832_v35 = vmul.f32 %v2841_v33, %v820_v34 }
 0x149   : > { %v2844_v36 = vsub.f32 %v814_v18, %v832_v35  ;;  %v901_v18 = vld [vmem:[%s2765_s23 + $0x18] sm:$0xff] }
 0x14a   : > { %968 = vmatpush.msra.mxu0 %v901_v18 }
 0x14b   : > { %v838_v37 = vmul.f32 %v2844_v36, %v2844_v36  ;;  %v824_v39 = vpop.xlane.xlu1 %823 }
 0x14c   : > { %v834_v42 = vmul.f32 %v2841_v33, %v824_v39  ;;  %969 = vmatpush.msra.mxu0 %v898_v21 }
 0x14d   : > { %841 = vadd.xlane.f32.xlu1 %v838_v37 }
 0x14e   : > { %v822_v38 = vpop.xlane.xlu0 %821  ;;  %v2854_v44 = vsub.f32 %v816_v19, %v834_v42  ;;  %v902_v19 = vld [vmem:[%s2765_s23 + $0x20] sm:$0xff] }
 0x14f   : > { %v833_v40 = vmul.f32 %v2841_v33, %v822_v38  ;;  %994 = vmatpush.msra.mxu1 %v902_v19 }
 0x150   : > { %v840_v45 = vmul.f32 %v2854_v44, %v2854_v44 }
 0x151   : > { %v2849_v41 = vsub.f32 %v815_v20, %v833_v40  ;;  %v903_v20 = vld [vmem:[%s2765_s23 + $0x28] sm:$0xff]  ;;  %995 = vmatpush.msra.mxu1 %v899_v22  ;;  %s3406_s23 = scalar_lea.vmem %s3340_s8, %s2741_s27 }
 0x152   : > { %1020 = vmatpush.msra.mxu2 %v903_v20 }
 0x153   : > { %v839_v43 = vmul.f32 %v2849_v41, %v2849_v41 }
 0x154   : > { %1021 = vmatpush.msra.mxu2 %v900_v23 }
 0x155   : > { %843 = vadd.xlane.f32.xlu2 %v839_v43 }
 0x15d   : > { %845 = vadd.xlane.f32.xlu2 %v840_v45  ;;  %v2392_v45 = vld [vmem:[%s3402_s26] ss:$0 sm:$0xff] }
 0x1c0   : > { %v842_v24 = vpop.xlane.xlu1 %841 }
 0x1c1   : > { %v847_v25 = vmul.f32 %v842_v24, %v2841_v33 }
 0x1c3   : > { %v850_v26 = vadd.f32 1e-05, %v847_v25 }
 0x1c5   : > { %2400 = vrsqrt.f32 %v850_v26  ;;  %vm859_vm3 = vweird.f32 %v850_v26 }
 0x1c8   : > { %v844_v27 = vpop.xlane.xlu2 %843 }
 0x1c9   : > { %v848_v28 = vmul.f32 %v844_v27, %v2841_v33 }
 0x1cb   : > { %v2401_v29 = vpop.eup %2400  ;;  %v851_v30 = vadd.f32 1e-05, %v848_v28 }
 0x1cc   : > { %v854_v31 = vmul.f32 %v2401_v29, %v850_v26  ;;  %vm860_vm2 = vweird.f32 %v2401_v29 }
 0x1cd   : > { %2402 = vrsqrt.f32 %v851_v30  ;;  %vm861_vm4 = vmor %vm859_vm3, %vm860_vm2  ;;  %vm869_vm6 = vweird.f32 %v851_v30 }
 0x1ce   : > { %v855_v32 = vmul.f32 %v2401_v29, %v854_v31 }
 0x1d0   : > { %v856_v34 = vmul.f32 0.5, %v855_v32  ;;  %v846_v35 = vpop.xlane.xlu2 %845 }
 0x1d1   : > { %v849_v37 = vmul.f32 %v846_v35, %v2841_v33  ;;  %v1032_v35 = vlaneseq }
 0x1d2   : > { %v857_v38 = vsub.f32 1.5, %v856_v34 }
 0x1d3   : > { %v2403_v39 = vpop.eup %2402  ;;  %v852_v40 = vadd.f32 1e-05, %v849_v37 }
 0x1d4   : > { %v858_v42 = vmul.f32 %v2401_v29, %v857_v38  ;;  %v864_v43 = vmul.f32 %v2403_v39, %v851_v30  ;;  %vm870_vm5 = vweird.f32 %v2403_v39  ;;  %v1033_v38 = vand.u32 127, %v1032_v35 }
 0x1d5   : > { %2404 = vrsqrt.f32 %v852_v40  ;;  %vm871_vm7 = vmor %vm869_vm6, %vm870_vm5  ;;  %vm879_vm9 = vweird.f32 %v852_v40 }
 0x1d6   : > { %v862_v46 = vsel %vm861_vm4, %v2401_v29, %v858_v42  ;;  %v865_v47 = vmul.f32 %v2403_v39, %v864_v43  ;;  %vm1034_vm12 = vcmp.lt.s32.totalorder %v1033_v38, 17  ;;  %v2571_v43 = vmov -1e+30  }
 0x1d7   : > { %v883_v48 = vmul.f32 %v862_v46, %v2844_v36 }
 0x1d8   : > { %v866_v50 = vmul.f32 0.5, %v865_v47 }
 0x1d9   : > { %v889_v51 = vmul.f32 %v2392_v45, %v883_v48 }
 0x1da   : > { %v867_v52 = vsub.f32 1.5, %v866_v50 }
 0x1db   : > { %v2405_v53 = vpop.eup %2404  ;;  %v895_v54 = vadd.f32 %v2393_v49, %v889_v51 }
 0x1dc   : > { %v868_v55 = vmul.f32 %v2403_v39, %v867_v52  ;;  %v874_v56 = vmul.f32 %v2405_v53, %v852_v40  ;;  %vm880_vm8 = vweird.f32 %v2405_v53 }
 0x1dd   : > { %970 = vmatmul.f32.vlgmr.msra.gmra.mxu0 %v895_v54  ;;  %996 = vmatmul.f32.vlgmr.msra.gmra.mxu1 %v895_v54  ;;  %vm881_vm10 = vmor %vm879_vm9, %vm880_vm8 }
 0x1de   : > { %v872_v57 = vsel %vm871_vm7, %v2403_v39, %v868_v55  ;;  %v875_v58 = vmul.f32 %v2405_v53, %v874_v56  ;;  %1022 = vmatmul.f32.vlgmr.msra.gmra.mxu2 %v895_v54 }
 0x1df   : > { %v884_v36 = vmul.f32 %v872_v57, %v2849_v41  ;;  %v946_v41 = vld [vmem:[%s2774_s20] sm:$0x7]  ;;  %s2570_s20 = smov 32  }
 0x1e0   : > { %v876_v59 = vmul.f32 0.5, %v875_v58  ;;  %v949_v4 = vperm.slane %v946_v41, 1  ;;  %v948_v14 = vperm.slane %v946_v41, 0  ;;  %v950_v15 = vperm.slane %v946_v41, 2 }
 0x1e1   : > { %v890_v60 = vmul.f32 %v2392_v45, %v884_v36 }
 0x1e2   : > { %v877_v61 = vsub.f32 1.5, %v876_v59 }
 0x1e3   : > { %v896_v62 = vadd.f32 %v2393_v49, %v890_v60 }
 0x1e4   : > { %v878_v63 = vmul.f32 %v2405_v53, %v877_v61 }
 0x1e5   : > { %973 = vmatmul.f32.gmra.mxu0 %v896_v62  ;;  %999 = vmatmul.f32.gmra.mxu1 %v896_v62 }
 0x1e6   : > { %v882_v0 = vsel %vm881_vm10, %v2405_v53, %v878_v63  ;;  %1025 = vmatmul.f32.gmra.mxu2 %v896_v62 }
 0x1e7   : > { %v885_v1 = vmul.f32 %v882_v0, %v2854_v44 }
 0x1e9   : > { %v891_v2 = vmul.f32 %v2392_v45, %v885_v1  ;;  %v2962_v45 = vsel %vm1034_vm12, 0.0, %v2571_v43 }
 0x1eb   : > { %v897_v3 = vadd.f32 %v2393_v49, %v891_v2 }
 0x1ed   : > { %976 = vmatmul.f32.gmra.mxu0 %v897_v3  ;;  %1002 = vmatmul.f32.gmra.mxu1 %v897_v3 }
 0x1ee   : > { %1028 = vmatmul.f32.gmra.mxu2 %v897_v3 }
 0x25a   : > { %v997_v5 = vpop.f32.mrf.mxu1  ;;  %v971_v10 = vpop.f32.mrf.mxu0 }
 0x25b   : > { %v998_v6 = vadd.f32 %v997_v5, %v949_v4  ;;  %v972_v19 = vadd.f32 %v971_v10, %v948_v14 }
 0x25d   : > { %1156 = vrot.lane.b32.xlu2 %v998_v6, %s2568_s15 }
 0x261   : > { %v1023_v7 = vpop.f32.mrf.mxu2 }
 0x262   : > { %v1000_v8 = vpop.f32.mrf.mxu1  ;;  %v974_v13 = vpop.f32.mrf.mxu0  ;;  %v2931_v22 = vadd.f32 %v1023_v7, %v950_v15 }
 0x263   : > { %v1001_v9 = vadd.f32 %v1000_v8, %v949_v4  ;;  %v975_v24 = vadd.f32 %v974_v13, %v948_v14 }
 0x265   : > { %1158 = vrot.lane.b32.xlu1 %v1001_v9, %s2568_s15 }
 0x269   : > { %v1026_v11 = vpop.f32.mrf.mxu2 }
 0x26a   : > { %v1003_v44 = vpop.f32.mrf.mxu1  ;;  %v1027_v17 = vadd.f32 %v1026_v11, %v950_v15  ;;  %v977_v21 = vpop.f32.mrf.mxu0 }
 0x26b   : > { %v1004_v12 = vadd.f32 %v1003_v44, %v949_v4  ;;  %v978_v23 = vadd.f32 %v977_v21, %v948_v14 }
 0x26d   : > { %1288 = vrot.lane.b32.xlu1 %v1001_v9, %s2569_s30  ;;  %1290 = vrot.lane.b32.xlu2 %v1004_v12, %s2569_s30 }
 0x26e   : > { %1160 = vrot.lane.b32.xlu0 %v1004_v12, %s2568_s15  ;;  %2240 = vmatpush.xpose.msk.msra.mxu3 %vm1036_vm11, %v1004_v12 }
 0x271   : > { %v1029_v16 = vpop.f32.mrf.mxu2 }
 0x272   : > { %v1030_v18 = vadd.f32 %v1029_v16, %v950_v15  ;;  %2241 = vmatpush.xpose.msk.msra.mxu3 %vm1036_vm11, %v1001_v9 }
 0x274   : > { %v2924_v20 = vpack.i.bf16 %v1027_v17, %v1030_v18 }
 0x275   : > { %1280 = vrot.lane.b32.xlu1 %v972_v19, %s2569_s30  ;;  %1286 = vrot.lane.b32.xlu2 %v998_v6, %s2569_s30 }
 0x276   : > { %1150 = vrot.lane.b32.xlu0 %v972_v19, %s2568_s15  ;;  %2242 = vmatpush.xpose.msk.msra.mxu3 %vm1036_vm11, %v998_v6 }
 0x279   : > { %2243 = vmatmul.msk.f32.vlgmr.msra.gmra.mxu3 %vm1036_vm11, %v972_v19 }
 0x27a   : > { %1137 = vmatpush.msrb.mxu3 %v1030_v18 }
 0x27c   : > { %1138 = vmatpush.msrb.mxu3 %v1027_v17 }
 0x27d   : > { %1415 = vrot.lane.b32.xlu1 %v1001_v9, %s2570_s20  ;;  %1154 = vrot.lane.b32.xlu2 %v978_v23, %s2568_s15 }
 0x27e   : > { %1139 = vmatpush.msrb.mxu3 %v2931_v22  ;;  %1152 = vrot.lane.b32.xlu0 %v975_v24, %s2568_s15 }
 0x281   : > { %2244 = vmatmul.msk.f32.gmra.mxu3 %vm1036_vm11, %v975_v24 }
 0x285   : > { %1407 = vrot.lane.b32.xlu1 %v972_v19, %s2570_s20  ;;  %1413 = vrot.lane.b32.xlu2 %v998_v6, %s2570_s20 }
 0x286   : > { %1417 = vrot.lane.b32.xlu0 %v1004_v12, %s2570_s20 }
 0x289   : > { %2245 = vmatmul.msk.f32.gmra.mxu3 %vm1036_vm11, %v978_v23 }
 0x28d   : > { %1411 = vrot.lane.b32.xlu1 %v978_v23, %s2570_s20  ;;  %1409 = vrot.lane.b32.xlu2 %v975_v24, %s2570_s20 }
 0x28e   : > { %1282 = vrot.lane.b32.xlu0 %v975_v24, %s2569_s30 }
 0x295   : > { %2383 = vrot.lane.b32.xlu1 %v2924_v20, %s2569_s30  ;;  %1236 = vrot.lane.b32.xlu2 %v2931_v22, %s2568_s15 }
 0x296   : > { %1284 = vrot.lane.b32.xlu0 %v978_v23, %s2569_s30 }
 0x29e   : > { %2378 = vrot.lane.b32.xlu0 %v2924_v20, %s2568_s15 }
 0x2b7   : > { %v1157_v25 = vpop.permute.xlu2 %1156 }
 0x2c7   : > { %v1291_v26 = vpop.permute.xlu2 %1290 }
 0x2c8   : > { %2258 = vmatpush.xpose.msk.msrb.mxu2 %vm1036_vm11, %v1291_v26 }
 0x2cf   : > { %v1287_v30 = vpop.permute.xlu2 %1286 }
 0x2d7   : > { %v1159_v27 = vpop.permute.xlu1 %1158  ;;  %v1155_v39 = vpop.permute.xlu2 %1154 }
 0x2df   : > { %v1289_v28 = vpop.permute.xlu1 %1288  ;;  %v1414_v50 = vpop.permute.xlu2 %1413 }
 0x2e0   : > { %v1161_v29 = vpop.permute.xlu0 %1160  ;;  %2259 = vmatpush.xpose.msk.msrb.mxu2 %vm1036_vm11, %v1289_v28 }
 0x2e1   : > { %2249 = vmatpush.xpose.msk.msrb.mxu0 %vm1036_vm11, %v1161_v29 }
 0x2e4   : > { %2260 = vmatpush.xpose.msk.msrb.mxu2 %vm1036_vm11, %v1287_v30 }
 0x2e5   : > { %2250 = vmatpush.xpose.msk.msrb.mxu0 %vm1036_vm11, %v1159_v27 }
 0x2e7   : > { %v1281_v31 = vpop.permute.xlu1 %1280  ;;  %v1410_v36 = vpop.permute.xlu2 %1409 }
 0x2e8   : > { %v1151_v32 = vpop.permute.xlu0 %1150  ;;  %2261 = vmatmul.msk.f32.vlgmr.msrb.gmra.mxu2 %vm1036_vm11, %v1281_v31 }
 0x2e9   : > { %2251 = vmatpush.xpose.msk.msrb.mxu0 %vm1036_vm11, %v1157_v25 }
 0x2ec   : > { %2252 = vmatmul.msk.f32.vlgmr.msrb.gmra.mxu0 %vm1036_vm11, %v1151_v32 }
 0x2ef   : > { %v1416_v34 = vpop.permute.xlu1 %1415  ;;  %v1237_v1 = vpop.permute.xlu2 %1236 }
 0x2f0   : > { %v1153_v37 = vpop.permute.xlu0 %1152 }
 0x2f4   : > { %2253 = vmatmul.msk.f32.gmra.mxu0 %vm1036_vm11, %v1153_v37 }
 0x2f7   : > { %v1408_v40 = vpop.permute.xlu1 %1407 }
 0x2f8   : > { %v1418_v42 = vpop.permute.xlu0 %1417 }
 0x2f9   : > { %2267 = vmatpush.xpose.msk.msra.mxu0 %vm1036_vm11, %v1418_v42 }
 0x2fc   : > { %v1072_v46 = vpop.f32.mrf.mxu3  ;;  %2254 = vmatmul.msk.f32.gmra.mxu0 %vm1036_vm11, %v1155_v39 }
 0x2fd   : > { %v1073_v47 = vadd.f32 %v1072_v46, %v2962_v45  ;;  %2268 = vmatpush.xpose.msk.msra.mxu0 %vm1036_vm11, %v1416_v34 }
 0x2ff   : > { %v1412_v48 = vpop.permute.xlu1 %1411  ;;  %v1082_v49 = vsel %vm1081_vm13, %v1073_v47, -inf }
 0x300   : > { %v1283_v51 = vpop.permute.xlu0 %1282  ;;  %1083 = vmax.xlane.f32.xlu0 %v1082_v49 }
 0x301   : > { %2262 = vmatmul.msk.f32.gmra.mxu2 %vm1036_vm11, %v1283_v51  ;;  %2269 = vmatpush.xpose.msk.msra.mxu0 %vm1036_vm11, %v1414_v50 }
 0x304   : > { %v1075_v52 = vpop.f32.mrf.mxu3  ;;  %2270 = vmatmul.msk.f32.vlgmr.msra.gmra.mxu0 %vm1036_vm11, %v1408_v40 }
 0x305   : > { %v1076_v53 = vadd.f32 %v1075_v52, %v2962_v45 }
 0x307   : > { %v1085_v54 = vsel %vm1081_vm13, %v1076_v53, -inf  ;;  %v2384_v55 = vpop.permute.xlu1 %2383 }
 0x308   : > { %1086 = vmax.xlane.f32.xlu1 %v1085_v54  ;;  %v2385_v56 = vunpack.i.l.bf16 %v2384_v55  ;;  %v1285_v57 = vpop.permute.xlu0 %1284  ;;  %v2386_v58 = vunpack.i.h.bf16 %v2384_v55 }
 0x309   : > { %2263 = vmatmul.msk.f32.gmra.mxu2 %vm1036_vm11, %v1285_v57 }
 0x30a   : > { %1394 = vmatpush.msra.mxu3 %v2385_v56 }
 0x30c   : > { %v1078_v59 = vpop.f32.mrf.mxu3  ;;  %2271 = vmatmul.msk.f32.gmra.mxu0 %vm1036_vm11, %v1410_v36  ;;  %1395 = vmatpush.msra.mxu3 %v2386_v58 }
 0x30d   : > { %v1079_v60 = vadd.f32 %v1078_v59, %v2962_v45 }
 0x30f   : > { %v1088_v61 = vsel %vm1081_vm13, %v1079_v60, -inf }
 0x310   : > { %v2379_v62 = vpop.permute.xlu0 %2378  ;;  %1089 = vmax.xlane.f32.xlu2 %v1088_v61 }
 0x311   : > { %v2380_v63 = vunpack.i.l.bf16 %v2379_v62  ;;  %v2381_v0 = vunpack.i.h.bf16 %v2379_v62 }
 0x313   : > { %1267 = vmatpush.msrb.mxu1 %v2380_v63 }
 0x314   : > { %2272 = vmatmul.msk.f32.gmra.mxu0 %vm1036_vm11, %v1412_v48 }
 0x315   : > { %1268 = vmatpush.msrb.mxu1 %v2381_v0 }
 0x317   : > { %1269 = vmatpush.msrb.mxu1 %v1237_v1 }
 0x369   : > { %v1191_v2 = vpop.f32.mrf.mxu0 }
 0x36a   : > { %v1192_v3 = vadd.f32 %v1191_v2, %v2962_v45 }
 0x36b   : > { %v1321_v41 = vpop.f32.mrf.mxu2 }
 0x36c   : > { %v1322_v4 = vadd.f32 %v1321_v41, %v2962_v45  ;;  %v1200_v5 = vsel %vm1081_vm13, %v1192_v3, -inf }
 0x36d   : > { %1201 = vmax.xlane.f32.xlu2 %v1200_v5 }
 0x36e   : > { %v1330_v6 = vsel %vm1081_vm13, %v1322_v4, -inf }
 0x36f   : > { %1331 = vmax.xlane.f32.xlu0 %v1330_v6 }
 0x371   : > { %v1194_v7 = vpop.f32.mrf.mxu0 }
 0x372   : > { %v1195_v8 = vadd.f32 %v1194_v7, %v2962_v45 }
 0x373   : > { %v1084_v9 = vpop.xlane.xlu0 %1083 }
 0x374   : > { %v1091_v10 = vsub.f32 %v1073_v47, %v1084_v9  ;;  %v1203_v44 = vsel %vm1081_vm13, %v1195_v8, -inf }
 0x376   : > { %v1094_v11 = vmul.f32 1.442695, %v1091_v10 }
 0x377   : > { %1204 = vmax.xlane.f32.xlu0 %v1203_v44 }
 0x378   : > { %2406 = vpow2.f32 %v1094_v11 }
 0x379   : > { %v1197_v12 = vpop.f32.mrf.mxu0 }
 0x37a   : > { %v1198_v26 = vadd.f32 %v1197_v12, %v2962_v45 }
 0x37b   : > { %v1087_v16 = vpop.xlane.xlu1 %1086 }
 0x37c   : > { %v1092_v19 = vsub.f32 %v1076_v53, %v1087_v16  ;;  %v1206_v34 = vsel %vm1081_vm13, %v1198_v26, -inf }
 0x37e   : > { %v2984_v13 = vpop.eup %2406  ;;  %v1096_v24 = vmul.f32 1.442695, %v1092_v19 }
 0x37f   : > { %v1100_v14 = vsel %vm1081_vm13, %v2984_v13, 0.0 }
 0x380   : > { %1101 = vadd.xlane.f32.xlu0 %v1100_v14  ;;  %2408 = vpow2.f32 %v1096_v24 }
 0x381   : > { %v1448_v15 = vpop.f32.mrf.mxu0 }
 0x382   : > { %v1449_v37 = vadd.f32 %v1448_v15, %v2962_v45 }
 0x383   : > { %v1090_v27 = vpop.xlane.xlu2 %1089 }
 0x384   : > { %v1324_v17 = vpop.f32.mrf.mxu2  ;;  %v1093_v31 = vsub.f32 %v1079_v60, %v1090_v27  ;;  %v1457_v40 = vsel %vm1081_vm13, %v1449_v37, -inf }
 0x385   : > { %v1325_v18 = vadd.f32 %v1324_v17, %v2962_v45 }
 0x386   : > { %v1098_v35 = vmul.f32 1.442695, %v1093_v31  ;;  %v3003_v38 = vpop.eup %2408 }
 0x387   : > { %v1333_v21 = vsel %vm1081_vm13, %v1325_v18, -inf  ;;  %v1103_v39 = vsel %vm1081_vm13, %v3003_v38, 0.0 }
 0x388   : > { %1334 = vmax.xlane.f32.xlu1 %v1333_v21  ;;  %2410 = vpow2.f32 %v1098_v35 }
 0x389   : > { %v1451_v23 = vpop.f32.mrf.mxu0 }
 0x38a   : > { %v2991_v25 = vadd.f32 %v1451_v23, %v2962_v45 }
 0x38c   : > { %v1327_v28 = vpop.f32.mrf.mxu2  ;;  %v1460_v29 = vsel %vm1081_vm13, %v2991_v25, -inf }
 0x38d   : > { %v2997_v30 = vadd.f32 %v1327_v28, %v2962_v45  ;;  %1461 = vmax.xlane.f32.xlu0 %v1460_v29 }
 0x38e   : > { %v3008_v42 = vpop.eup %2410 }
 0x38f   : > { %v1336_v32 = vsel %vm1081_vm13, %v2997_v30, -inf  ;;  %v1106_v43 = vsel %vm1081_vm13, %v3008_v42, 0.0 }
 0x390   : > { %1337 = vmax.xlane.f32.xlu2 %v1336_v32  ;;  %1207 = vmax.xlane.f32.xlu1 %v1206_v34 }
 0x391   : > { %v1454_v46 = vpop.f32.mrf.mxu0 }
 0x392   : > { %v3013_v47 = vadd.f32 %v1454_v46, %v2962_v45 }
 0x394   : > { %v1463_v48 = vsel %vm1081_vm13, %v3013_v47, -inf }
 0x398   : > { %1104 = vadd.xlane.f32.xlu1 %v1103_v39  ;;  %1458 = vmax.xlane.f32.xlu2 %v1457_v40 }
 0x3a0   : > { %1107 = vadd.xlane.f32.xlu1 %v1106_v43 }
 0x3a8   : > { %1464 = vmax.xlane.f32.xlu1 %v1463_v48 }
 0x3e0   : > { %v1202_v49 = vpop.xlane.xlu2 %1201 }
 0x3e1   : > { %v1209_v50 = vsub.f32 %v1192_v3, %v1202_v49 }
 0x3e2   : > { %v1332_v51 = vpop.xlane.xlu0 %1331 }
 0x3e3   : > { %v1212_v52 = vmul.f32 1.442695, %v1209_v50  ;;  %v1339_v53 = vsub.f32 %v1322_v4, %v1332_v51 }
 0x3e5   : > { %2412 = vpow2.f32 %v1212_v52  ;;  %v1342_v54 = vmul.f32 1.442695, %v1339_v53 }
 0x3e7   : > { %2414 = vpow2.f32 %v1342_v54 }
 0x3ea   : > { %v1205_v55 = vpop.xlane.xlu0 %1204 }
 0x3eb   : > { %v3017_v56 = vpop.eup %2412  ;;  %v1210_v57 = vsub.f32 %v1195_v8, %v1205_v55 }
 0x3ec   : > { %v1218_v45 = vsel %vm1081_vm13, %v3017_v56, 0.0 }
 0x3ed   : > { %v3021_v58 = vpop.eup %2414  ;;  %v1214_v36 = vmul.f32 1.442695, %v1210_v57  ;;  %1219 = vadd.xlane.f32.xlu2 %v1218_v45 }
 0x3ee   : > { %v1348_v59 = vsel %vm1081_vm13, %v3021_v58, 0.0 }
 0x3ef   : > { %2416 = vpow2.f32 %v1214_v36  ;;  %1349 = vadd.xlane.f32.xlu0 %v1348_v59 }
 0x3f3   : > { %v1102_v60 = vpop.xlane.xlu0 %1101 }
 0x3f4   : > { %2418 = vrcp.f32 %v1102_v60 }
 0x3f5   : > { %v3025_v61 = vpop.eup %2416 }
 0x3f6   : > { %v1221_v62 = vsel %vm1081_vm13, %v3025_v61, 0.0 }
 0x3f7   : > { %1222 = vadd.xlane.f32.xlu2 %v1221_v62 }
 0x3fa   : > { %v2419_v63 = vpop.eup %2418 }
 0x3fb   : > { %v1335_v0 = vpop.xlane.xlu1 %1334  ;;  %v1112_v1 = vmul.f32 %v2419_v63, %v2984_v13 }
 0x3fc   : > { %v1340_v2 = vsub.f32 %v1325_v18, %v1335_v0 }
 0x3fd   : > { %2246 = vmatmul.msk.f32.vlgmr.msrb.gmra.mxu3 %vm1081_vm13, %v1112_v1 }
 0x3fe   : > { %v1344_v3 = vmul.f32 1.442695, %v1340_v2 }
 0x400   : > { %2420 = vpow2.f32 %v1344_v3 }
 0x403   : > { %v1208_v41 = vpop.xlane.xlu1 %1207  ;;  %v1338_v4 = vpop.xlane.xlu2 %1337  ;;  %1363 = vrot.lane.b32.xlu0 %v2931_v22, %s2569_s30 }
 0x404   : > { %v1211_v5 = vsub.f32 %v1198_v26, %v1208_v41  ;;  %v1341_v8 = vsub.f32 %v2997_v30, %v1338_v4  ;;  %v1462_v26 = vpop.xlane.xlu0 %1461 }
 0x405   : > { %v1467_v28 = vsub.f32 %v2991_v25, %v1462_v26  ;;  %v2466_v26 = vld [vmem:[#allocation2 + $0x10] sm:$0xff] }
 0x406   : > { %v3033_v6 = vpop.eup %2420  ;;  %v1216_v7 = vmul.f32 1.442695, %v1211_v5  ;;  %v1346_v10 = vmul.f32 1.442695, %v1341_v8 }
 0x407   : > { %v1351_v9 = vsel %vm1081_vm13, %v3033_v6, 0.0  ;;  %v1471_v30 = vmul.f32 1.442695, %v1467_v28 }
 0x408   : > { %2422 = vpow2.f32 %v1216_v7  ;;  %1352 = vadd.xlane.f32.xlu1 %v1351_v9 }
 0x40b   : > { %v1105_v11 = vpop.xlane.xlu1 %1104  ;;  %v1459_v44 = vpop.xlane.xlu2 %1458 }
 0x40c   : > { %2424 = vrcp.f32 %v1105_v11  ;;  %v1466_v12 = vsub.f32 %v1449_v37, %v1459_v44 }
 0x40d   : > { %2426 = vpow2.f32 %v1346_v10 }
 0x40e   : > { %v3038_v13 = vpop.eup %2422  ;;  %v1469_v14 = vmul.f32 1.442695, %v1466_v12 }
 0x40f   : > { %v1224_v15 = vsel %vm1081_vm13, %v3038_v13, 0.0 }
 0x410   : > { %2428 = vpow2.f32 %v1469_v14  ;;  %1225 = vadd.xlane.f32.xlu1 %v1224_v15 }
 0x412   : > { %v2425_v16 = vpop.eup %2424 }
 0x413   : > { %v1108_v17 = vpop.xlane.xlu1 %1107  ;;  %v1113_v18 = vmul.f32 %v2425_v16, %v3003_v38  ;;  %v2427_v19 = vpop.eup %2426 }
 0x414   : > { %2430 = vrcp.f32 %v1108_v17  ;;  %v1354_v23 = vsel %vm1081_vm13, %v2427_v19, 0.0 }
 0x415   : > { %2247 = vmatmul.msk.f32.gmra.mxu3 %vm1081_vm13, %v1113_v18  ;;  %2432 = vpow2.f32 %v1471_v30 }
 0x416   : > { %v3044_v21 = vpop.eup %2428 }
 0x417   : > { %v1475_v24 = vsel %vm1081_vm13, %v3044_v21, 0.0 }
 0x418   : > { %1355 = vadd.xlane.f32.xlu1 %v1354_v23  ;;  %1476 = vadd.xlane.f32.xlu2 %v1475_v24 }
 0x41a   : > { %v2431_v27 = vpop.eup %2430 }
 0x41b   : > { %v1114_v29 = vmul.f32 %v2431_v27, %v3008_v42  ;;  %v2433_v31 = vpop.eup %2432  ;;  %v1465_v34 = vpop.xlane.xlu1 %1464 }
 0x41c   : > { %v1478_v32 = vsel %vm1081_vm13, %v2433_v31, 0.0  ;;  %v1468_v35 = vsub.f32 %v3013_v47, %v1465_v34  ;;  %v2467_v34 = vld [vmem:[#allocation2] sm:$0xff] }
 0x41d   : > { %2248 = vmatmul.msk.f32.gmra.mxu3 %vm1081_vm13, %v1114_v29 }
 0x41e   : > { %v1473_v25 = vmul.f32 1.442695, %v1468_v35 }
 0x420   : > { %2434 = vpow2.f32 %v1473_v25 }
 0x426   : > { %v2435_v37 = vpop.eup %2434 }
 0x427   : > { %v1481_v38 = vsel %vm1081_vm13, %v2435_v37, 0.0 }
 0x42d   : > { %1479 = vadd.xlane.f32.xlu0 %v1478_v32 }
 0x430   : > { %2388 = vrot.lane.b32.xlu2 %v2924_v20, %s2570_s20 }
 0x431   : > { %1490 = vrot.lane.b32.xlu1 %v2931_v22, %s2570_s20 }
 0x459   : > { %1482 = vadd.xlane.f32.xlu2 %v1481_v38 }
 0x460   : > { %v1220_v39 = vpop.xlane.xlu2 %1219 }
 0x461   : > { %2436 = vrcp.f32 %v1220_v39 }
 0x462   : > { %v1350_v43 = vpop.xlane.xlu0 %1349 }
 0x467   : > { %v2437_v40 = vpop.eup %2436 }
 0x468   : > { %v1230_v42 = vmul.f32 %v2437_v40, %v3017_v56 }
 0x46a   : > { %2255 = vmatmul.msk.f32.vlgmr.msrb.gmra.mxu1 %vm1081_vm13, %v1230_v42  ;;  %v1223_v20 = vpop.xlane.xlu2 %1222 }
 0x46b   : > { %2438 = vrcp.f32 %v1223_v20 }
 0x46c   : > { %2440 = vrcp.f32 %v1350_v43  ;;  %v2468_v43 = vld [vmem:[#allocation2 + $0x8] sm:$0xff] }
 0x471   : > { %v2439_v22 = vpop.eup %2438 }
 0x472   : > { %v2441_v46 = vpop.eup %2440  ;;  %v1231_v47 = vmul.f32 %v2439_v22, %v3025_v61 }
 0x473   : > { %v1360_v48 = vmul.f32 %v2441_v46, %v3021_v58 }
 0x474   : > { %2256 = vmatmul.msk.f32.gmra.mxu1 %vm1081_vm13, %v1231_v47 }
 0x475   : > { %v1364_v49 = vpop.permute.xlu0 %1363 }
 0x476   : > { %1396 = vmatpush.msra.mxu3 %v1364_v49 }
 0x477   : > { %2264 = vmatmul.msk.f32.vlgmr.msra.gmra.mxu3 %vm1081_vm13, %v1360_v48 }
 0x47b   : > { %v1353_v50 = vpop.xlane.xlu1 %1352 }
 0x47c   : > { %2442 = vrcp.f32 %v1353_v50 }
 0x480   : > { %v1141_v5 = vpop.f32.mrf.mxu3 }
 0x482   : > { %v2443_v51 = vpop.eup %2442 }
 0x483   : > { %v1226_v52 = vpop.xlane.xlu1 %1225  ;;  %v1361_v53 = vmul.f32 %v2443_v51, %v3033_v6 }
 0x484   : > { %2444 = vrcp.f32 %v1226_v52 }
 0x485   : > { %2265 = vmatmul.msk.f32.gmra.mxu3 %vm1081_vm13, %v1361_v53  ;;  %v1673_v53 = vld [vmem:[%s2780_s14 + $0x78] sm:$0xff] }
 0x486   : > { %1678 = vmatpush.msra.mxu2 %v1673_v53  ;;  %v1851_v53 = vld [vmem:[%s2789_s22 + $0x78] sm:$0xff] }
 0x487   : > { %1856 = vmatpush.msrb.mxu3 %v1851_v53 }
 0x48a   : > { %v2445_v54 = vpop.eup %2444 }
 0x48b   : > { %v1356_v55 = vpop.xlane.xlu1 %1355  ;;  %v1477_v56 = vpop.xlane.xlu2 %1476  ;;  %v1232_v57 = vmul.f32 %v2445_v54, %v3038_v13  ;;  %v1672_v54 = vld [vmem:[%s2780_s14 + $0x70] sm:$0xff] }
 0x48c   : > { %2446 = vrcp.f32 %v1356_v55  ;;  %1679 = vmatpush.msra.mxu2 %v1672_v54  ;;  %v1850_v54 = vld [vmem:[%s2789_s22 + $0x70] sm:$0xff] }
 0x48d   : > { %2257 = vmatmul.msk.f32.gmra.mxu1 %vm1081_vm13, %v1232_v57  ;;  %2448 = vrcp.f32 %v1477_v56  ;;  %1857 = vmatpush.msrb.mxu3 %v1850_v54 }
 0x492   : > { %v2447_v45 = vpop.eup %2446 }
 0x493   : > { %v2389_v58 = vpop.permute.xlu2 %2388  ;;  %v1362_v36 = vmul.f32 %v2447_v45, %v2427_v19  ;;  %v2449_v61 = vpop.eup %2448 }
 0x494   : > { %v2390_v59 = vunpack.i.l.bf16 %v2389_v58  ;;  %v2391_v60 = vunpack.i.h.bf16 %v2389_v58  ;;  %v1487_v63 = vmul.f32 %v2449_v61, %v3044_v21  ;;  %v1671_v58 = vld [vmem:[%s2780_s14 + $0x68] sm:$0xff] }
 0x495   : > { %2266 = vmatmul.msk.f32.gmra.mxu3 %vm1081_vm13, %v1362_v36  ;;  %1680 = vmatpush.msra.mxu2 %v1671_v58  ;;  %v1670_v36 = vld [vmem:[%s2780_s14 + $0x60] sm:$0xff]  ;;  %v1667_v61 = vld [vmem:[%s2780_s14 + $0x48] sm:$0xff] }
 0x496   : > { %1521 = vmatpush.msra.mxu1 %v2390_v59  ;;  %v1669_v59 = vld [vmem:[%s2780_s14 + $0x58] sm:$0xff] }
 0x497   : > { %1681 = vmatpush.msra.mxu2 %v1670_v36 }
 0x498   : > { %1522 = vmatpush.msra.mxu1 %v2391_v60  ;;  %v1144_v7 = vpop.f32.mrf.mxu3  ;;  %v1668_v60 = vld [vmem:[%s2780_s14 + $0x50] sm:$0xff] }
 0x499   : > { %1682 = vmatpush.msra.mxu2 %v1669_v59  ;;  %v1846_v59 = vld [vmem:[%s2789_s22 + $0x50] sm:$0xff] }
 0x49b   : > { %1683 = vmatpush.msra.mxu2 %v1668_v60 }
 0x49d   : > { %1684 = vmatpush.msra.mxu2 %v1667_v61  ;;  %v1845_v61 = vld [vmem:[%s2789_s22 + $0x48] sm:$0xff] }
 0x4a0   : > { %v1480_v62 = vpop.xlane.xlu0 %1479  ;;  %v1147_v9 = vpop.f32.mrf.mxu3 }
 0x4a1   : > { %2450 = vrcp.f32 %v1480_v62  ;;  %v1666_v62 = vld [vmem:[%s2780_s14 + $0x40] sm:$0xff] }
 0x4a2   : > { %1685 = vmatpush.msra.mxu2 %v1666_v62 }
 0x4a3   : > { %v1491_v0 = vpop.permute.xlu1 %1490 }
 0x4a4   : > { %1523 = vmatpush.msra.mxu1 %v1491_v0  ;;  %v1664_v0 = vld [vmem:[%s2780_s14 + $0x30] sm:$0xff] }
 0x4a5   : > { %2273 = vmatmul.msk.f32.vlgmr.msra.gmra.mxu1 %vm1081_vm13, %v1487_v63  ;;  %v1665_v63 = vld [vmem:[%s2780_s14 + $0x38] sm:$0xff] }
 0x4a6   : > { %1686 = vmatpush.msra.mxu2 %v1665_v63  ;;  %v1844_v63 = vld [vmem:[%s2789_s22 + $0x40] sm:$0xff] }
 0x4a7   : > { %v2451_v1 = vpop.eup %2450 }
 0x4a8   : > { %v1488_v2 = vmul.f32 %v2451_v1, %v2433_v31  ;;  %1687 = vmatpush.msra.mxu2 %v1664_v0  ;;  %v1663_v1 = vld [vmem:[%s2780_s14 + $0x28] sm:$0xff] }
 0x4aa   : > { %1688 = vmatpush.msra.mxu2 %v1663_v1  ;;  %v1843_v1 = vld [vmem:[%s2789_s22 + $0x38] sm:$0xff] }
 0x4ad   : > { %2274 = vmatmul.msk.f32.gmra.mxu1 %vm1081_vm13, %v1488_v2  ;;  %v1662_v2 = vld [vmem:[%s2780_s14 + $0x20] sm:$0xff] }
 0x4ae   : > { %1689 = vmatpush.msra.mxu2 %v1662_v2 }
 0x4cc   : > { %v1483_v3 = vpop.xlane.xlu2 %1482 }
 0x4cd   : > { %2452 = vrcp.f32 %v1483_v3  ;;  %v1661_v3 = vld [vmem:[%s2780_s14 + $0x18] sm:$0xff] }
 0x4ce   : > { %1690 = vmatpush.msra.mxu2 %v1661_v3 }
 0x4d3   : > { %v2453_v41 = vpop.eup %2452 }
 0x4d4   : > { %v1489_v4 = vmul.f32 %v2453_v41, %v2435_v37  ;;  %v1660_v41 = vld [vmem:[%s2780_s14 + $0x10] sm:$0xff] }
 0x4d5   : > { %1691 = vmatpush.msra.mxu2 %v1660_v41 }
 0x4d6   : > { %2275 = vmatmul.msk.f32.gmra.mxu1 %vm1081_vm13, %v1489_v4  ;;  %v1659_v4 = vld [vmem:[%s2780_s14 + $0x8] sm:$0xff] }
 0x4d7   : > { %1692 = vmatpush.msra.mxu2 %v1659_v4 }
 0x4e7   : > { %v1271_v6 = vpop.f32.mrf.mxu1 }
 0x4e8   : > { %1537 = vrot.lane.b32.xlu1 %v1271_v6, %s2570_s20 }
 0x4f1   : > { %v1274_v8 = vpop.f32.mrf.mxu1 }
 0x4f2   : > { %1539 = vrot.lane.b32.xlu1 %v1274_v8, %s2570_s20 }
 0x4fa   : > { %v1398_v10 = vpop.f32.mrf.mxu3 }
 0x4fb   : > { %1549 = vrot.lane.b32.xlu0 %v1398_v10, %s2569_s30 }
 0x508   : > { %v1401_v11 = vpop.f32.mrf.mxu3 }
 0x509   : > { %1551 = vrot.lane.b32.xlu2 %v1401_v11, %s2569_s30 }
 0x50a   : > { %v1277_v44 = vpop.f32.mrf.mxu1 }
 0x518   : > { %v1404_v14 = vpop.f32.mrf.mxu3 }
 0x522   : > { %v1525_v12 = vpop.f32.mrf.mxu1 }
 0x523   : > { %1561 = vrot.lane.b32.xlu1 %v1525_v12, %s2568_s15 }
 0x52a   : > { %v1528_v13 = vpop.f32.mrf.mxu1 }
 0x52b   : > { %1541 = vrot.lane.b32.xlu1 %v1277_v44, %s2570_s20  ;;  %1563 = vrot.lane.b32.xlu0 %v1528_v13, %s2568_s15  ;;  %s3412_s20 = sld [smem:[#allocation25_spill]] (!%p2279_p1) }
 0x533   : > { %1553 = vrot.lane.b32.xlu0 %v1404_v14, %s2569_s30 }
 0x553   : > { %v1531_v15 = vpop.f32.mrf.mxu1 }
 0x554   : > { %1565 = vrot.lane.b32.xlu1 %v1531_v15, %s2568_s15  ;;  %s3410_s15 = smov (!%p2279_p1), %s3409_s19 }
 0x55a   : > { %v1538_v16 = vpop.permute.xlu1 %1537 }
 0x55b   : > { %v1570_v19 = vsel %vm1036_vm11, %v1141_v5, %v1538_v16  ;;  %v1658_v5 = vld [vmem:[%s2780_s14] sm:$0xff] }
 0x55c   : > { %1693 = vmatpush.msra.mxu2 %v1658_v5  ;;  %v1842_v5 = vld [vmem:[%s2789_s22 + $0x30] sm:$0xff] }
 0x563   : > { %v1552_v29 = vpop.permute.xlu2 %1551 }
 0x564   : > { %v1540_v17 = vpop.permute.xlu1 %1539 }
 0x565   : > { %v1571_v28 = vsel %vm1036_vm11, %v1144_v7, %v1540_v17 }
 0x566   : > { %v1575_v30 = vsel %vm1573_vm15, %v1571_v28, %v1552_v29 }
 0x56d   : > { %v1550_v18 = vpop.permute.xlu0 %1549 }
 0x56e   : > { %v1574_v21 = vsel %vm1573_vm15, %v1570_v19, %v1550_v18  ;;  %v2394_v19 = vld [vmem:[%s3405_s1] ss:$0 sm:$0xff] }
 0x595   : > { %v1562_v23 = vpop.permute.xlu1 %1561 }
 0x596   : > { %v1578_v24 = vsel %vm1577_vm14, %v1574_v21, %v1562_v23 }
 0x597   : > { %v3086_v27 = vadd.f32 %v2466_v26, %v1578_v24  ;;  %v2395_v26 = vld [vmem:[%s3406_s23] ss:$0 sm:$0xff] }
 0x599   : > { %1586 = vadd.xlane.f32.xlu0 %v3086_v27 }
 0x59d   : > { %v1564_v31 = vpop.permute.xlu0 %1563  ;;  %v1542_v25 = vpop.permute.xlu1 %1541 }
 0x59e   : > { %v1579_v32 = vsel %vm1577_vm14, %v1575_v30, %v1564_v31  ;;  %v1572_v38 = vsel %vm1036_vm11, %v1147_v9, %v1542_v25 }
 0x59f   : > { %v3092_v35 = vadd.f32 %v2467_v34, %v1579_v32 }
 0x5a1   : > { %1588 = vadd.xlane.f32.xlu1 %v3092_v35 }
 0x5a5   : > { %v1554_v37 = vpop.permute.xlu0 %1553 }
 0x5a6   : > { %v1576_v39 = vsel %vm1573_vm15, %v1572_v38, %v1554_v37 }
 0x5c6   : > { %v1566_v40 = vpop.permute.xlu1 %1565 }
 0x5c7   : > { %v1580_v42 = vsel %vm1577_vm14, %v1576_v39, %v1566_v40 }
 0x5c8   : > { %v3098_v20 = vadd.f32 %v2468_v43, %v1580_v42 }
 0x5ca   : > { %1590 = vadd.xlane.f32.xlu2 %v3098_v20 }
 0x60c   : > { %v1587_v22 = vpop.xlane.xlu0 %1586 }
 0x60d   : > { %v1592_v46 = vmul.f32 %v1587_v22, %v2841_v33 }
 0x60f   : > { %v3103_v47 = vsub.f32 %v3086_v27, %v1592_v46 }
 0x611   : > { %v1598_v48 = vmul.f32 %v3103_v47, %v3103_v47 }
 0x613   : > { %1601 = vadd.xlane.f32.xlu0 %v1598_v48 }
 0x614   : > { %v1589_v49 = vpop.xlane.xlu1 %1588 }
 0x615   : > { %v1593_v50 = vmul.f32 %v1589_v49, %v2841_v33 }
 0x617   : > { %v3109_v51 = vsub.f32 %v3092_v35, %v1593_v50 }
 0x619   : > { %v1599_v52 = vmul.f32 %v3109_v51, %v3109_v51 }
 0x61b   : > { %1603 = vadd.xlane.f32.xlu1 %v1599_v52 }
 0x63d   : > { %v1591_v55 = vpop.xlane.xlu2 %1590 }
 0x63e   : > { %v1594_v56 = vmul.f32 %v1591_v55, %v2841_v33  ;;  %v1849_v55 = vld [vmem:[%s2789_s22 + $0x68] sm:$0xff] }
 0x63f   : > { %1858 = vmatpush.msrb.mxu3 %v1849_v55 }
 0x640   : > { %v3117_v57 = vsub.f32 %v3098_v20, %v1594_v56  ;;  %v3159_v56 = vld [vmem:[%s3407_s29] ss:$0 sm:$0xff] }
 0x642   : > { %v1600_v45 = vmul.f32 %v3117_v57, %v3117_v57 }
 0x644   : > { %1605 = vadd.xlane.f32.xlu2 %v1600_v45  ;;  %v1847_v45 = vld [vmem:[%s2789_s22 + $0x58] sm:$0xff] }
 0x686   : > { %v1602_v6 = vpop.xlane.xlu0 %1601 }
 0x687   : > { %v1607_v7 = vmul.f32 %v1602_v6, %v2841_v33 }
 0x689   : > { %v1610_v8 = vadd.f32 1e-05, %v1607_v7 }
 0x68b   : > { %2454 = vrsqrt.f32 %v1610_v8  ;;  %vm1619_vm1 = vweird.f32 %v1610_v8 }
 0x68e   : > { %v1604_v9 = vpop.xlane.xlu1 %1603 }
 0x68f   : > { %v1608_v10 = vmul.f32 %v1604_v9, %v2841_v33 }
 0x691   : > { %v2455_v11 = vpop.eup %2454  ;;  %v1611_v44 = vadd.f32 1e-05, %v1608_v10 }
 0x692   : > { %v1614_v12 = vmul.f32 %v2455_v11, %v1610_v8  ;;  %vm1620_vm0 = vweird.f32 %v2455_v11  ;;  %v1841_v8 = vld [vmem:[%s2789_s22 + $0x28] sm:$0xff] }
 0x693   : > { %2456 = vrsqrt.f32 %v1611_v44  ;;  %vm1621_vm2 = vmor %vm1619_vm1, %vm1620_vm0  ;;  %vm1629_vm4 = vweird.f32 %v1611_v44 }
 0x694   : > { %v1615_v13 = vmul.f32 %v2455_v11, %v1614_v12 }
 0x696   : > { %v1616_v14 = vmul.f32 0.5, %v1615_v13 }
 0x698   : > { %v1617_v15 = vsub.f32 1.5, %v1616_v14  ;;  %v1839_v14 = vld [vmem:[%s2789_s22 + $0x18] sm:$0xff] }
 0x699   : > { %v2457_v16 = vpop.eup %2456 }
 0x69a   : > { %v1618_v17 = vmul.f32 %v2455_v11, %v1617_v15  ;;  %v1624_v18 = vmul.f32 %v2457_v16, %v1611_v44  ;;  %vm1630_vm3 = vweird.f32 %v2457_v16  ;;  %v1840_v44 = vld [vmem:[%s2789_s22 + $0x20] sm:$0xff] }
 0x69b   : > { %vm1631_vm5 = vmor %vm1629_vm4, %vm1630_vm3 }
 0x69c   : > { %v1622_v21 = vsel %vm1621_vm2, %v2455_v11, %v1618_v17  ;;  %v1625_v23 = vmul.f32 %v2457_v16, %v1624_v18  ;;  %v1838_v18 = vld [vmem:[%s2789_s22 + $0x10] sm:$0xff] }
 0x69d   : > { %v1643_v24 = vmul.f32 %v1622_v21, %v3103_v47 }
 0x69e   : > { %v1626_v28 = vmul.f32 0.5, %v1625_v23 }
 0x69f   : > { %v1649_v29 = vmul.f32 %v2394_v19, %v1643_v24  ;;  %v1837_v24 = vld [vmem:[%s2789_s22 + $0x8] sm:$0xff] }
 0x6a0   : > { %v1627_v30 = vsub.f32 1.5, %v1626_v28 }
 0x6a1   : > { %v1655_v31 = vadd.f32 %v2395_v26, %v1649_v29 }
 0x6a2   : > { %v1628_v32 = vmul.f32 %v2457_v16, %v1627_v30 }
 0x6a3   : > { %1694 = vmatmul.f32.vlgmr.msra.gmra.mxu2 %v1655_v31  ;;  %v1836_v31 = vld [vmem:[%s2789_s22] sm:$0xff] }
 0x6a4   : > { %v1632_v34 = vsel %vm1631_vm5, %v2457_v16, %v1628_v32 }
 0x6a5   : > { %v1644_v25 = vmul.f32 %v1632_v34, %v3109_v51 }
 0x6a7   : > { %v1650_v37 = vmul.f32 %v2394_v19, %v1644_v25 }
 0x6a9   : > { %v1656_v38 = vadd.f32 %v2395_v26, %v1650_v37 }
 0x6ab   : > { %1697 = vmatmul.f32.gmra.mxu2 %v1656_v38 }
 0x6b7   : > { %v1606_v39 = vpop.xlane.xlu2 %1605 }
 0x6b8   : > { %v1609_v40 = vmul.f32 %v1606_v39, %v2841_v33 }
 0x6ba   : > { %v1612_v42 = vadd.f32 1e-05, %v1609_v40 }
 0x6bc   : > { %2458 = vrsqrt.f32 %v1612_v42  ;;  %vm1639_vm7 = vweird.f32 %v1612_v42 }
 0x6c2   : > { %v2459_v43 = vpop.eup %2458 }
 0x6c3   : > { %v1634_v22 = vmul.f32 %v2459_v43, %v1612_v42  ;;  %vm1640_vm6 = vweird.f32 %v2459_v43 }
 0x6c4   : > { %vm1641_vm8 = vmor %vm1639_vm7, %vm1640_vm6 }
 0x6c5   : > { %v1635_v46 = vmul.f32 %v2459_v43, %v1634_v22 }
 0x6c7   : > { %v1636_v47 = vmul.f32 0.5, %v1635_v46 }
 0x6c9   : > { %v1637_v48 = vsub.f32 1.5, %v1636_v47 }
 0x6cb   : > { %v1638_v49 = vmul.f32 %v2459_v43, %v1637_v48 }
 0x6cd   : > { %v1642_v50 = vsel %vm1641_vm8, %v2459_v43, %v1638_v49 }
 0x6ce   : > { %v1645_v33 = vmul.f32 %v1642_v50, %v3117_v57  ;;  %v1848_v57 = vld [vmem:[%s2789_s22 + $0x60] sm:$0xff] }
 0x6cf   : > { %1859 = vmatpush.msrb.mxu3 %v1848_v57 }
 0x6d0   : > { %v1651_v51 = vmul.f32 %v2394_v19, %v1645_v33 }
 0x6d1   : > { %1860 = vmatpush.msrb.mxu3 %v1847_v45 }
 0x6d2   : > { %v1657_v52 = vadd.f32 %v2395_v26, %v1651_v51 }
 0x6d3   : > { %1861 = vmatpush.msrb.mxu3 %v1846_v59 }
 0x6d4   : > { %1700 = vmatmul.f32.gmra.mxu2 %v1657_v52 }
 0x6d5   : > { %1862 = vmatpush.msrb.mxu3 %v1845_v61 }
 0x6d7   : > { %1863 = vmatpush.msrb.mxu3 %v1844_v63 }
 0x6d9   : > { %1864 = vmatpush.msrb.mxu3 %v1843_v1 }
 0x6db   : > { %1865 = vmatpush.msrb.mxu3 %v1842_v5 }
 0x6dd   : > { %1866 = vmatpush.msrb.mxu3 %v1841_v8 }
 0x6df   : > { %1867 = vmatpush.msrb.mxu3 %v1840_v44 }
 0x6e1   : > { %1868 = vmatpush.msrb.mxu3 %v1839_v14 }
 0x6e3   : > { %1869 = vmatpush.msrb.mxu3 %v1838_v18 }
 0x6e5   : > { %1870 = vmatpush.msrb.mxu3 %v1837_v24 }
 0x6e7   : > { %1871 = vmatpush.msrb.mxu3 %v1836_v31 }
 0x726   : > { %v1695_v58 = vpop.f32.mrf.mxu2 }
 0x727   : > { %v3164_v36 = vadd.f32 %v3159_v56, %v1695_v58 }
 0x729   : > { %v3168_v60 = vmul.f32 0.70710677, %v3164_v36 }
 0x72b   : > { %v1710_v62 = vmul.f32 %v3168_v60, %v3168_v60 }
 0x72d   : > { %v1711_v0 = vmin.f32 %v1710_v62, 16.0 }
 0x72e   : > { %v1698_v2 = vpop.f32.mrf.mxu2 }
 0x72f   : > { %v1712_v3 = vmul.f32 2.1237322e-06, %v1711_v0  ;;  %v1723_v41 = vmul.f32 3.8918573e-05, %v1711_v0  ;;  %v3176_v4 = vadd.f32 %v3159_v56, %v1698_v2 }
 0x731   : > { %v1713_v6 = vadd.f32 0.00028619796, %v1712_v3  ;;  %v1724_v7 = vadd.f32 0.001143296, %v1723_v41  ;;  %v3181_v9 = vmul.f32 0.70710677, %v3176_v4 }
 0x733   : > { %v1714_v10 = vmul.f32 %v1713_v6, %v1711_v0  ;;  %v1725_v11 = vmul.f32 %v1724_v7, %v1711_v0  ;;  %v1750_v12 = vmul.f32 %v3181_v9, %v3181_v9 }
 0x735   : > { %v1726_v13 = vadd.f32 0.014752088, %v1725_v11  ;;  %v1715_v15 = vadd.f32 0.0036580483, %v1714_v10  ;;  %v1751_v16 = vmin.f32 %v1750_v12, 16.0 }
 0x737   : > { %v1727_v17 = vmul.f32 %v1726_v13, %v1711_v0  ;;  %v1752_v19 = vmul.f32 2.1237322e-06, %v1751_v16  ;;  %v1763_v21 = vmul.f32 3.8918573e-05, %v1751_v16  ;;  %v1716_v26 = vmul.f32 %v1715_v15, %v1711_v0 }
 0x739   : > { %v1728_v23 = vadd.f32 0.112945676, %v1727_v17  ;;  %v1753_v28 = vadd.f32 0.00028619796, %v1752_v19  ;;  %v1764_v29 = vadd.f32 0.001143296, %v1763_v21 }
 0x73a   : > { %v1717_v37 = vadd.f32 0.05243302, %v1716_v26  ;;  %v1704_v17 = vmul.f32 0.5, %v3164_v36 }
 0x73b   : > { %v1729_v30 = vmul.f32 %v1728_v23, %v1711_v0  ;;  %v1754_v32 = vmul.f32 %v1753_v28, %v1751_v16  ;;  %v1765_v34 = vmul.f32 %v1764_v29, %v1751_v16 }
 0x73c   : > { %v1718_v22 = vmul.f32 %v1717_v37, %v1711_v0 }
 0x73d   : > { %v1730_v25 = vadd.f32 0.4994258, %v1729_v30  ;;  %v1766_v38 = vadd.f32 0.014752088, %v1765_v34  ;;  %v1755_v40 = vadd.f32 0.0036580483, %v1754_v32 }
 0x73e   : > { %v1719_v49 = vadd.f32 0.18741608, %v1718_v22 }
 0x73f   : > { %v1731_v39 = vmul.f32 %v1730_v25, %v1711_v0  ;;  %v1767_v42 = vmul.f32 %v1766_v38, %v1751_v16  ;;  %v1756_v47 = vmul.f32 %v1755_v40, %v1751_v16 }
 0x740   : > { %v1720_v53 = vmul.f32 %v1719_v49, %v1711_v0 }
 0x741   : > { %v1732_v43 = vadd.f32 1.0, %v1731_v39  ;;  %v1768_v46 = vadd.f32 0.112945676, %v1767_v42  ;;  %v1757_v33 = vadd.f32 0.05243302, %v1756_v47 }
 0x742   : > { %v1721_v59 = vadd.f32 1.1283791, %v1720_v53 }
 0x743   : > { %2460 = vrcp.f32 %v1732_v43  ;;  %v1769_v48 = vmul.f32 %v1768_v46, %v1751_v16  ;;  %v1758_v57 = vmul.f32 %v1757_v33, %v1751_v16  ;;  %v1744_v58 = vand.u32 2147483648, %v1732_v43 }
 0x744   : > { %v1742_v62 = vand.u32 2147483647, %v1732_v43  ;;  %vm1738_vm10 = vweird.f32 %v1732_v43  ;;  %v1722_v41 = vmul.f32 %v1721_v59, %v3168_v60 }
 0x745   : > { %v1770_v50 = vadd.f32 0.4994258, %v1769_v48  ;;  %v1759_v63 = vadd.f32 0.18741608, %v1758_v57  ;;  %v1745_v2 = vor.u32 1.1754944e-38, %v1744_v58 }
 0x746   : > { %vm1743_vm12 = vcmp.eq.f32.partialorder %v1742_v62, 8.507059e+37 }
 0x747   : > { %v1771_v51 = vmul.f32 %v1770_v50, %v1751_v16  ;;  %v1760_v6 = vmul.f32 %v1759_v63, %v1751_v16 }
 0x749   : > { %v2461_v52 = vpop.eup %2460  ;;  %v1772_v55 = vadd.f32 1.0, %v1771_v51  ;;  %v1761_v12 = vadd.f32 1.1283791, %v1760_v6 }
 0x74a   : > { %v1734_v54 = vmul.f32 %v2461_v52, %v1732_v43  ;;  %vm1739_vm9 = vweird.f32 %v2461_v52 }
 0x74b   : > { %2462 = vrcp.f32 %v1772_v55  ;;  %vm1740_vm11 = vmor %vm1738_vm10, %vm1739_vm9  ;;  %v1784_v44 = vand.u32 2147483648, %v1772_v55  ;;  %v1782_v15 = vand.u32 2147483647, %v1772_v55  ;;  %vm1778_vm14 = vweird.f32 %v1772_v55 }
 0x74c   : > { %v1735_v45 = vsub.f32 1.0, %v1734_v54  ;;  %v1762_v24 = vmul.f32 %v1761_v12, %v3181_v9 }
 0x74d   : > { %v1785_v16 = vor.u32 1.1754944e-38, %v1784_v44  ;;  %vm1783_vm1 = vcmp.eq.f32.partialorder %v1782_v15, 8.507059e+37 }
 0x74e   : > { %v1736_v61 = vmul.f32 %v2461_v52, %v1735_v45 }
 0x750   : > { %v1737_v1 = vadd.f32 %v2461_v52, %v1736_v61 }
 0x751   : > { %v2463_v3 = vpop.eup %2462 }
 0x752   : > { %v1741_v5 = vsel %vm1740_vm11, %v2461_v52, %v1737_v1  ;;  %v1774_v7 = vmul.f32 %v2463_v3, %v1772_v55  ;;  %vm1779_vm13 = vweird.f32 %v2463_v3 }
 0x753   : > { %v1746_v0 = vsel %vm1743_vm12, %v1745_v2, %v1741_v5  ;;  %vm1780_vm0 = vmor %vm1778_vm14, %vm1779_vm13 }
 0x754   : > { %v1747_v8 = vmul.f32 %v1746_v0, %v1722_v41  ;;  %v1775_v10 = vsub.f32 1.0, %v1774_v7 }
 0x756   : > { %v2276_v11 = vclamps-f32 %v1747_v8, 1.0  ;;  %v1776_v14 = vmul.f32 %v2463_v3, %v1775_v10  ;;  %v2397_v8 = vld [vmem:[%s753_s16] ss:$0 sm:$0xff] }
 0x757   : > { %v1701_v13 = vpop.f32.mrf.mxu2 }
 0x758   : > { %v1830_v18 = vadd.f32 1.0, %v2276_v11  ;;  %v1702_v19 = vadd.f32 %v3159_v56, %v1701_v13  ;;  %v1777_v60 = vadd.f32 %v2463_v3, %v1776_v14  ;;  %v1705_v56 = vmul.f32 0.5, %v3176_v4 }
 0x75a   : > { %v1833_v21 = vmul.f32 %v1830_v18, %v1704_v17  ;;  %v1709_v23 = vmul.f32 0.70710677, %v1702_v19  ;;  %v1781_v26 = vsel %vm1780_vm0, %v2463_v3, %v1777_v60  ;;  %v1706_v0 = vmul.f32 0.5, %v1702_v19 }
 0x75b   : > { %v1786_v29 = vsel %vm1783_vm1, %v1785_v16, %v1781_v26 }
 0x75c   : > { %v1790_v28 = vmul.f32 %v1709_v23, %v1709_v23  ;;  %1872 = vmatmul.f32.vlgmr.msrb.gmra.mxu3 %v1833_v21  ;;  %v1787_v30 = vmul.f32 %v1786_v29, %v1762_v24 }
 0x75e   : > { %v1791_v31 = vmin.f32 %v1790_v28, 16.0  ;;  %v2277_v32 = vclamps-f32 %v1787_v30, 1.0 }
 0x760   : > { %v1792_v36 = vmul.f32 2.1237322e-06, %v1791_v31  ;;  %v1803_v34 = vmul.f32 3.8918573e-05, %v1791_v31  ;;  %v1831_v25 = vadd.f32 1.0, %v2277_v32 }
 0x762   : > { %v1793_v37 = vadd.f32 0.00028619796, %v1792_v36  ;;  %v1804_v38 = vadd.f32 0.001143296, %v1803_v34  ;;  %v1834_v39 = vmul.f32 %v1831_v25, %v1705_v56 }
 0x764   : > { %v1794_v40 = vmul.f32 %v1793_v37, %v1791_v31  ;;  %v1805_v42 = vmul.f32 %v1804_v38, %v1791_v31  ;;  %1875 = vmatmul.f32.gmra.mxu3 %v1834_v39 }
 0x766   : > { %v1806_v9 = vadd.f32 0.014752088, %v1805_v42  ;;  %v1795_v43 = vadd.f32 0.0036580483, %v1794_v40 }
 0x768   : > { %v1807_v22 = vmul.f32 %v1806_v9, %v1791_v31  ;;  %v1796_v47 = vmul.f32 %v1795_v43, %v1791_v31 }
 0x76a   : > { %v1808_v46 = vadd.f32 0.112945676, %v1807_v22  ;;  %v1797_v50 = vadd.f32 0.05243302, %v1796_v47 }
 0x76c   : > { %v1809_v48 = vmul.f32 %v1808_v46, %v1791_v31  ;;  %v1798_v52 = vmul.f32 %v1797_v50, %v1791_v31 }
 0x76e   : > { %v1810_v49 = vadd.f32 0.4994258, %v1809_v48  ;;  %v1799_v4 = vadd.f32 0.18741608, %v1798_v52 }
 0x770   : > { %v1811_v33 = vmul.f32 %v1810_v49, %v1791_v31  ;;  %v1800_v54 = vmul.f32 %v1799_v4, %v1791_v31 }
 0x772   : > { %v1812_v51 = vadd.f32 1.0, %v1811_v33  ;;  %v1801_v58 = vadd.f32 1.1283791, %v1800_v54 }
 0x774   : > { %2464 = vrcp.f32 %v1812_v51  ;;  %v1824_v45 = vand.u32 2147483648, %v1812_v51  ;;  %v1822_v61 = vand.u32 2147483647, %v1812_v51  ;;  %vm1818_vm3 = vweird.f32 %v1812_v51 }
 0x775   : > { %v1802_v1 = vmul.f32 %v1801_v58, %v1709_v23 }
 0x776   : > { %v1825_v63 = vor.u32 1.1754944e-38, %v1824_v45  ;;  %vm1823_vm5 = vcmp.eq.f32.partialorder %v1822_v61, 8.507059e+37 }
 0x77a   : > { %v2465_v53 = vpop.eup %2464 }
 0x77b   : > { %v1814_v55 = vmul.f32 %v2465_v53, %v1812_v51  ;;  %vm1819_vm2 = vweird.f32 %v2465_v53 }
 0x77c   : > { %vm1820_vm4 = vmor %vm1818_vm3, %vm1819_vm2 }
 0x77d   : > { %v1815_v57 = vsub.f32 1.0, %v1814_v55 }
 0x77f   : > { %v1816_v59 = vmul.f32 %v2465_v53, %v1815_v57 }
 0x781   : > { %v1817_v62 = vadd.f32 %v2465_v53, %v1816_v59 }
 0x783   : > { %v1821_v2 = vsel %vm1820_vm4, %v2465_v53, %v1817_v62 }
 0x784   : > { %v1826_v3 = vsel %vm1823_vm5, %v1825_v63, %v1821_v2 }
 0x785   : > { %v1827_v41 = vmul.f32 %v1826_v3, %v1802_v1 }
 0x787   : > { %v2278_v5 = vclamps-f32 %v1827_v41, 1.0 }
 0x789   : > { %v1832_v6 = vadd.f32 1.0, %v2278_v5 }
 0x78b   : > { %v1835_v7 = vmul.f32 %v1832_v6, %v1706_v0 }
 0x78d   : > { %1878 = vmatmul.f32.gmra.mxu3 %v1835_v7 }
 0x7df   : > { %v1873_v10 = vpop.f32.mrf.mxu3 }
 0x7e0   : > { %v1874_v11 = vadd.f32 %v2397_v8, %v1873_v10 }
 0x7e2   : > { %v1882_v44 = vadd.f32 %v1874_v11, %v3086_v27 }
 0x7e4   : > { %1885 = vst [vmem:[#allocation2 + $0x10] sm:$0xff] %v1882_v44 }
 0x7e7   : > { %v1876_v12 = vpop.f32.mrf.mxu3 }
 0x7e8   : > { %v1877_v13 = vadd.f32 %v2397_v8, %v1876_v12 }
 0x7ea   : > { %v1883_v14 = vadd.f32 %v1877_v13, %v3092_v35 }
 0x7ec   : > { %1886 = vst [vmem:[#allocation2] sm:$0xff] %v1883_v14 }
 0x810   : > { %v1879_v15 = vpop.f32.mrf.mxu3 }
 0x811   : > { %v1880_v17 = vadd.f32 %v2397_v8, %v1879_v15  ;;  %1891 = sbr.rel (%p2279_p1) target bundleno = 2410 (0x96a), region = 96 }
 0x813   : > { %v1884_v18 = vadd.f32 %v1880_v17, %v3098_v20 }
 0x815   : > { %1887 = vst [vmem:[#allocation2 + $0x8] sm:$0xff] %v1884_v18 }
 0x816   : > { %1892 = vst [vmem:[%s2798_s5] sm:$0xff] %v1882_v44  ;;  %v1910_v27 = vld [vmem:[%s3409_s19 + $0x78] sm:$0xff]  ;;  %v1909_v35 = vld [vmem:[%s3410_s15 + $0x70] sm:$0xff]  ;;  %v1908_v20 = vld [vmem:[%s3410_s15 + $0x68] sm:$0xff]  ;;  %s3413_s19 = sld [smem:[#allocation27_spill]]  ;;  %vm2008_vm10 = vcmask 122880  }
 0x817   : > { %1893 = vst [vmem:[%s2798_s5 + $0x8] sm:$0xff] %v1883_v14  ;;  %1912 = vmatpush.msra.mxu0 %v1910_v27  ;;  %v1907_v19 = vld [vmem:[%s3410_s15 + $0x60] sm:$0xff]  ;;  %v1906_v60 = vld [vmem:[%s3410_s15 + $0x58] sm:$0xff]  ;;  %v1905_v21 = vld [vmem:[%s3410_s15 + $0x50] sm:$0xff] }
 0x818   : > { %1894 = vst [vmem:[%s2798_s5 + $0x10] sm:$0xff] %v1884_v18  ;;  %v1904_v23 = vld [vmem:[%s3410_s15 + $0x48] sm:$0xff]  ;;  %v1903_v16 = vld [vmem:[%s3410_s15 + $0x40] sm:$0xff]  ;;  %v1902_v24 = vld [vmem:[%s3410_s15 + $0x38] sm:$0xff] }
 0x819   : > { %1913 = vmatpush.msra.mxu0 %v1909_v35  ;;  %v1901_v26 = vld [vmem:[%s3410_s15 + $0x30] sm:$0xff]  ;;  %v1900_v28 = vld [vmem:[%s3410_s15 + $0x28] sm:$0xff]  ;;  %v1899_v29 = vld [vmem:[%s3410_s15 + $0x20] sm:$0xff] }
 0x81a   : > { %v1898_v30 = vld [vmem:[%s3410_s15 + $0x18] sm:$0xff]  ;;  %v1897_v31 = vld [vmem:[%s3410_s15 + $0x10] sm:$0xff]  ;;  %v1896_v32 = vld [vmem:[%s3410_s15 + $0x8] sm:$0xff] }
 0x81b   : > { %1914 = vmatpush.msra.mxu0 %v1908_v20  ;;  %v1895_v36 = vld [vmem:[%s3410_s15] sm:$0xff]  ;;  %v1983_v34 = vld [vmem:[%s3411_s4 + $0x38] sm:$0xff]  ;;  %v1982_v56 = vld [vmem:[%s3411_s4 + $0x30] sm:$0xff] }
 0x81c   : > { %v1911_v25 = vld [vmem:[%s3412_s20] sm:$0x1]  ;;  %1996 = vmatpush.msra.mxu1 %v1983_v34  ;;  %v1981_v37 = vld [vmem:[%s3411_s4 + $0x28] sm:$0xff]  ;;  %v1979_v9 = vld [vmem:[%s3411_s4 + $0x18] sm:$0xff] }
 0x81d   : > { %1915 = vmatpush.msra.mxu0 %v1907_v19  ;;  %v1980_v40 = vld [vmem:[%s3411_s4 + $0x20] sm:$0xff]  ;;  %v1978_v22 = vld [vmem:[%s3411_s4 + $0x10] sm:$0xff]  ;;  %v1977_v47 = vld [vmem:[%s3411_s4 + $0x8] sm:$0xff] }
 0x81e   : > { %1997 = vmatpush.msra.mxu1 %v1982_v56  ;;  %v1976_v49 = vld [vmem:[%s3411_s4] sm:$0xff] }
 0x81f   : > { %1916 = vmatpush.msra.mxu0 %v1906_v60  ;;  %v1984_v20 = vld [vmem:[%s3413_s19] sm:$0x1] }
 0x820   : > { %1998 = vmatpush.msra.mxu1 %v1981_v37 }
 0x821   : > { %1917 = vmatpush.msra.mxu0 %v1905_v21 }
 0x822   : > { %1999 = vmatpush.msra.mxu1 %v1980_v40 }
 0x823   : > { %1918 = vmatpush.msra.mxu0 %v1904_v23 }
 0x824   : > { %2000 = vmatpush.msra.mxu1 %v1979_v9 }
 0x825   : > { %1919 = vmatpush.msra.mxu0 %v1903_v16 }
 0x826   : > { %2001 = vmatpush.msra.mxu1 %v1978_v22 }
 0x827   : > { %1920 = vmatpush.msra.mxu0 %v1902_v24 }
 0x828   : > { %2002 = vmatpush.msra.mxu1 %v1977_v47 }
 0x829   : > { %1921 = vmatpush.msra.mxu0 %v1901_v26 }
 0x82a   : > { %2003 = vmatpush.msra.mxu1 %v1976_v49 }
 0x82b   : > { %1922 = vmatpush.msra.mxu0 %v1900_v28 }
 0x82d   : > { %1923 = vmatpush.msra.mxu0 %v1899_v29 }
 0x82f   : > { %1924 = vmatpush.msra.mxu0 %v1898_v30 }
 0x831   : > { %1925 = vmatpush.msra.mxu0 %v1897_v31 }
 0x833   : > { %1926 = vmatpush.msra.mxu0 %v1896_v32 }
 0x835   : > { %1927 = vmatpush.msra.mxu0 %v1895_v36 }
 0x836   : > { %1928 = vmatmul.f32.vlgmr.msra.gmra.mxu0 %v1882_v44 }
 0x8b3   : > { %v1929_v38 = vpop.f32.mrf.mxu0 }
 0x8b4   : > { %v1930_v39 = vadd.f32 %v1929_v38, %v1911_v25 }
 0x8b6   : > { %v1933_v42 = vmul.f32 0.70710677, %v1930_v39  ;;  %v1932_v18 = vmul.f32 0.5, %v1930_v39 }
 0x8b8   : > { %v1934_v43 = vmul.f32 %v1933_v42, %v1933_v42 }
 0x8ba   : > { %v1935_v46 = vmin.f32 %v1934_v43, 16.0 }
 0x8bc   : > { %v1936_v48 = vmul.f32 2.1237322e-06, %v1935_v46  ;;  %v1947_v50 = vmul.f32 3.8918573e-05, %v1935_v46 }
 0x8be   : > { %v1937_v33 = vadd.f32 0.00028619796, %v1936_v48  ;;  %v1948_v51 = vadd.f32 0.001143296, %v1947_v50 }
 0x8c0   : > { %v1938_v52 = vmul.f32 %v1937_v33, %v1935_v46  ;;  %v1949_v4 = vmul.f32 %v1948_v51, %v1935_v46 }
 0x8c2   : > { %v1950_v53 = vadd.f32 0.014752088, %v1949_v4  ;;  %v1939_v54 = vadd.f32 0.0036580483, %v1938_v52 }
 0x8c4   : > { %v1951_v55 = vmul.f32 %v1950_v53, %v1935_v46  ;;  %v1940_v45 = vmul.f32 %v1939_v54, %v1935_v46 }
 0x8c6   : > { %v1952_v57 = vadd.f32 0.112945676, %v1951_v55  ;;  %v1941_v61 = vadd.f32 0.05243302, %v1940_v45 }
 0x8c8   : > { %v1953_v58 = vmul.f32 %v1952_v57, %v1935_v46  ;;  %v1942_v1 = vmul.f32 %v1941_v61, %v1935_v46 }
 0x8ca   : > { %v1954_v59 = vadd.f32 0.4994258, %v1953_v58  ;;  %v1943_v2 = vadd.f32 0.18741608, %v1942_v1 }
 0x8cc   : > { %v1955_v62 = vmul.f32 %v1954_v59, %v1935_v46  ;;  %v1944_v41 = vmul.f32 %v1943_v2, %v1935_v46 }
 0x8ce   : > { %v1956_v63 = vadd.f32 1.0, %v1955_v62  ;;  %v1945_v7 = vadd.f32 1.1283791, %v1944_v41 }
 0x8d0   : > { %2469 = vrcp.f32 %v1956_v63  ;;  %v1968_v6 = vand.u32 2147483648, %v1956_v63  ;;  %v1966_v10 = vand.u32 2147483647, %v1956_v63  ;;  %vm1962_vm7 = vweird.f32 %v1956_v63 }
 0x8d1   : > { %v1946_v12 = vmul.f32 %v1945_v7, %v1933_v42 }
 0x8d2   : > { %v1969_v44 = vor.u32 1.1754944e-38, %v1968_v6  ;;  %vm1967_vm9 = vcmp.eq.f32.partialorder %v1966_v10, 8.507059e+37 }
 0x8d6   : > { %v2470_v3 = vpop.eup %2469 }
 0x8d7   : > { %v1958_v5 = vmul.f32 %v2470_v3, %v1956_v63  ;;  %vm1963_vm6 = vweird.f32 %v2470_v3 }
 0x8d8   : > { %vm1964_vm8 = vmor %vm1962_vm7, %vm1963_vm6 }
 0x8d9   : > { %v1959_v0 = vsub.f32 1.0, %v1958_v5 }
 0x8db   : > { %v1960_v8 = vmul.f32 %v2470_v3, %v1959_v0 }
 0x8dd   : > { %v1961_v11 = vadd.f32 %v2470_v3, %v1960_v8 }
 0x8df   : > { %v1965_v13 = vsel %vm1964_vm8, %v2470_v3, %v1961_v11 }
 0x8e0   : > { %v1970_v14 = vsel %vm1967_vm9, %v1969_v44, %v1965_v13 }
 0x8e1   : > { %v1971_v15 = vmul.f32 %v1970_v14, %v1946_v12 }
 0x8e3   : > { %v2280_v17 = vclamps-f32 %v1971_v15, 1.0 }
 0x8e5   : > { %v1974_v27 = vadd.f32 1.0, %v2280_v17 }
 0x8e7   : > { %v1975_v35 = vmul.f32 %v1974_v27, %v1932_v18 }
 0x8e9   : > { %2281 = vmatmul.msk.f32.vlgmr.msra.gmra.mxu1 %vm1573_vm15, %v1975_v35 }
 0x966   : > { %v2005_v19 = vpop.f32.mrf.mxu1 }
 0x967   : > { %v2006_v60 = vadd.f32 %v2005_v19, %v1984_v20 }
 0x969   : > { %2009 = vst.msk [vmem:[%s2802_s25] sm:$0x1] %vm2008_vm10, %v2006_v60 }
 0x96a PF: > { %s3414_s30 = sld [smem:[#allocation9_spill]]  ;;  %s2029_s23 = sshll.u32 %s2802_s25, 4  ;;  %s2030_s23 = int_to_ptr.vmem [resolvable:$true] %s2029_s23 }
 0x96b   : > { %s3415_s0 = sld [smem:[#allocation28_spill]]  ;;  %s3418_s26 = sand.u32 1, %s2541_s28  }
 0x96c   : > { %s2016_s5 = scalar_lea.sflag [#allocation4], %s3418_s26 }
 0x971   : > { %s3416_s18 = smov %s3415_s0  ;;  %s2027_s21 = scalar_lea.hbm %s3415_s0, %s3414_s30 }
 0x972   : > { %s2031_s6 = sshll.u32 %s2027_s21, 4  ;;  %s2491_s16 = scalar_lea.hbm %s3416_s18, 2  ;;  %s2032_s6 = int_to_ptr.hbm [resolvable:$true] %s2031_s6 }
 0x973   : > { %s2485_s29 = sshra.s32 %s2032_s6, 4  ;;  %s2486_s29 = int_to_ptr.hbm [resolvable:$true] %s2485_s29 }
 0x974   : > { %s2487_s22 = scalar_lea.hbm %s2486_s29, 1  ;;  %p2492_p6 = scmp.lt.s32.totalorder %s2486_s29, %s3416_s18 }
 0x975   : > { %p2488_p2 = scmp.ne.s32.totalorder %s2486_s29, %s2487_s22  ;;  %p2493_p7 = scmp.lt.s32.totalorder %s2491_s16, %s2487_s22 }
 0x977   : > { %p2489_p4 = pnand %p2488_p2, %p2716_p3  ;;  %p2494_p8 = por %p2493_p7, %p2492_p6 }
 0x979   : > { %p2490_p5 = pneg %p2489_p4 }
 0x97b   : > { %p2495_p10 = pnand %p2494_p8, %p2490_p5 }
 0x97d   : > { %2498 = shalt.err (!%p2495_p10)
}
 0x97e   : > { %2301 = dma.vmem_to_hbm [thread:$0]  (%p2716_p3), %s2030_s23, 16, %s2032_s6, %s2016_s5  }
 0x97f PF: > { %s3419_s25 = sld [smem:[#allocation12_spill]] }
 0x980   : > { %s3420_s30 = sld [smem:[#allocation6_spill]] }
 0x985   : > { %p2307_p11 = scmp.ge.s32.totalorder %s3419_s25, 2 }
 0x986   : > { %s2051_s0 = sand.u32 1, %s3420_s30  }
 0x987   : > { %p2304_p12 = pnand %p2307_p11, %p2726_p9  ;;  %s2052_s21 = scalar_lea.sflag [#allocation4], %s2051_s0 }
 0x989   : > { %p2305_p13 = pneg %p2304_p12 }
 0x98b   : > { %2532 = dma.done.wait (%p2305_p13), %s2052_s21, 16  }
 0x98c   : > { %2534 = vsyncadd (%p2305_p13), %s2052_s21, 4294967280  ;;  %s32_s20 = sadd.s32 1, %s3419_s25   ;;  %s3422_s26 = sld [smem:[#allocation7_spill]] }
 0x98d   : > { %p29_p0 = scmp.ge.s32.totalorder %s32_s20, 6   ;;  %s3423_s29 = sld [smem:[#allocation17_spill]] }
 0x98e   : > { %s3424_s30 = sld [smem:[#allocation10_spill]]  ;;  %s3428_s27 = smov %s2541_s28 }
 0x98f   : > { %s3425_s0 = sld [smem:[#allocation11_spill]]  ;;  %31 = sbr.rel (!%p29_p0) target bundleno = 17 (0x11), region = 173 }
 0x990   : > { %s3426_s19 = sld [smem:[#allocation13_spill]] }
 0x991   : > { %s3427_s1 = sld [smem:[#allocation15_spill]] }
 0x992   : > { %s3429_s28 = smov %s3422_s26 }
 0x994   :  { %2057 = vsyncpa [#allocation4], 1 }
 0x995   :  { %2059 = vsyncpa [#allocation4 + $0x1], 1 }

</bundles_post_ra>
